<compile_context>
chip_gen: v7x
topology: tpu7x:2x2x1
jax: 0.10.0
libtpu: 0.0.40
codegen_flags: <defaults>
</compile_context>

<pallas_src>
import functools

import numpy as np

import jax
import jax.numpy as jnp
from jax.experimental import pallas as pl
from jax.experimental.pallas import tpu as pltpu

LEAKY_SLOPE = 0.01
BN_EPS = 1e-5

# bf16 weight storage for the MXU (f32 accumulation).  Set to jnp.float32 to
# recover bit-closer f32 parity with the PyTorch reference.
MXU_WEIGHT_DTYPE = jnp.bfloat16


# ----------------------------- fused Pallas kernel -------------------------- #

def _make_encoder_kernel(n_conv_layers, samples_per_layer, b_real):
    """samples_per_layer[l] = B_real * Ho_l * Wo_l (static Python ints)."""

    def kernel(*refs):
        x_ref, traj_ref = refs[0], refs[1]
        conv_refs = refs[2:2 + 4 * n_conv_layers]
        (tw_ref, tb_ref, hw_conv_ref, hw_traj_ref, hb_ref,
         o_ref) = refs[2 + 4 * n_conv_layers:]

        # Row mask: padded batch rows must not contribute to BN statistics.
        b_pad = x_ref.shape[0]
        row_ids = jax.lax.broadcasted_iota(jnp.int32, (b_pad, 1), 0)
        row_mask = (row_ids < b_real).astype(jnp.float32)          # (B_pad, 1)

        x = x_ref[...]                               # (B_pad, Cin*H*W), NCHW-flat
        for l in range(n_conv_layers):
            m_ref, rt_ref, g_ref, bf_ref = conv_refs[4 * l: 4 * l + 4]
            inv_n = 1.0 / float(samples_per_layer[l])
            rt = rt_ref[...]                         # (Cout, Cout*Ho*Wo), 0/1 f32

            # Conv as one MXU matmul (bf16 operands, f32 accumulate).  The conv
            # bias is omitted: it is exactly cancelled by the BN mean
            # subtraction below (train-mode batch statistics).
            y = jnp.dot(x.astype(m_ref.dtype), m_ref[...],
                        preferred_element_type=jnp.float32)        # (B_pad, Cout*Ho*Wo)

            # --- train-mode BatchNorm, two-pass batch statistics (f32) -------
            rowsum = jnp.sum(y * row_mask, axis=0, keepdims=True)  # (1, Cout*Ho*Wo)
            mean_c = jax.lax.dot_general(                           # pool per channel
                rowsum, rt, (((1,), (1,)), ((), ())),
                preferred_element_type=jnp.float32) * inv_n         # (1, Cout)
            mean_full = jnp.dot(mean_c, rt,
                                preferred_element_type=jnp.float32)  # (1, Cout*Ho*Wo)
            centered = y - mean_full

            sqsum = jnp.sum(centered * centered * row_mask, axis=0,
                            keepdims=True)
            var_c = jax.lax.dot_general(
                sqsum, rt, (((1,), (1,)), ((), ())),
                preferred_element_type=jnp.float32) * inv_n          # biased var
            scale_c = g_ref[...] * jax.lax.rsqrt(var_c + BN_EPS)     # gamma/std
            scale_full = jnp.dot(scale_c, rt,
                                 preferred_element_type=jnp.float32)

            # z = gamma * (y - mean)/std + beta   (beta broadcast precomputed)
            z = centered * scale_full + bf_ref[...]
            x = jnp.where(z >= 0, z, LEAKY_SLOPE * z)                # LeakyReLU(0.01)

        # x is now torch.flatten(stroke_encoder(stroke), 1): (B_pad, C_last*Ho*Wo).

        # traj_encoder: Linear(24, traj_hidden) + LeakyReLU.
        t = jnp.dot(traj_ref[...].astype(tw_ref.dtype), tw_ref[...],
                    preferred_element_type=jnp.float32) + tb_ref[...]
        x2 = jnp.where(t >= 0, t, LEAKY_SLOPE * t)

        # Merged mean/var head.  torch.cat([x1, x2], 1) @ [Wm | Wv] is computed
        # as a split matmul, and the column dim is zero-padded to 128 lanes so
        # the single store is lane-dense / unmasked.
        out = (jnp.dot(x.astype(hw_conv_ref.dtype), hw_conv_ref[...],
                       preferred_element_type=jnp.float32)
               + jnp.dot(x2.astype(hw_traj_ref.dtype), hw_traj_ref[...],
                         preferred_element_type=jnp.float32)
               + hb_ref[...])
        o_ref[...] = out                              # (B_pad, 128) lane-dense store

    return kernel


# ----------------------- host-side operand pre-lowering --------------------- #

def _conv_as_matmul(w, h, w_sp, stride=2, pad=1):
    """Lower a kxk / stride / pad conv to a dense matrix.

    w: (kH, kW, Cin, Cout).  Returns M such that
      (B, Cin*H*W) @ M == conv2d(x, w) flattened in NCHW order
    with column order c*Ho*Wo + oh*Wo + ow.
    """
    k = w.shape[0]
    cin, cout = w.shape[2], w.shape[3]
    ho = (h + 2 * pad - k) // stride + 1
    wo = (w_sp + 2 * pad - k) // stride + 1
    sel = np.zeros((h * w_sp, ho * wo, k, k), np.float32)
    for oh in range(ho):
        for ow in range(wo):
            for di in range(k):
                for dj in range(k):
                    ih = stride * oh - pad + di
                    iw = stride * ow - pad + dj
                    if 0 <= ih < h and 0 <= iw < w_sp:
                        sel[ih * w_sp + iw, oh * wo + ow, di, dj] = 1.0
    m = jnp.einsum("xoij,ijcd->cxdo", jnp.asarray(sel), w)
    return m.reshape(cin * h * w_sp, cout * ho * wo), ho, wo


def init_params(key, stroke_hidden_dims, traj_hidden_dim, latent_dim):
    params = {"conv": []}
    prev_d = 1
    for d in stroke_hidden_dims:
        key, k1, k2, k3, k4 = jax.random.split(key, 5)
        w = jax.random.normal(k1, (3, 3, prev_d, d), jnp.float32) * 0.1
        b = jax.random.normal(k2, (d,), jnp.float32) * 0.01   # cancelled by BN
        gamma = 1.0 + 0.1 * jax.random.normal(k3, (d,), jnp.float32)
        beta = 0.1 * jax.random.normal(k4, (d,), jnp.float32)
        params["conv"].append((w, b, gamma, beta))
        prev_d = d

    feat_dim = 2 * 2 * stroke_hidden_dims[-1] + traj_hidden_dim

    key, k1, k2 = jax.random.split(key, 3)
    params["traj"] = (jax.random.normal(k1, (24, traj_hidden_dim), jnp.float32) * 0.1,
                      jax.random.normal(k2, (traj_hidden_dim,), jnp.float32) * 0.01)
    key, k1, k2 = jax.random.split(key, 3)
    params["mean_fc"] = (jax.random.normal(k1, (feat_dim, latent_dim), jnp.float32) * 0.1,
                         jax.random.normal(k2, (latent_dim,), jnp.float32) * 0.01)
    key, k1, k2 = jax.random.split(key, 3)
    params["var_fc"] = (jax.random.normal(k1, (feat_dim, latent_dim), jnp.float32) * 0.1,
                        jax.random.normal(k2, (latent_dim,), jnp.float32) * 0.01)
    return params


def build_kernel_operands(params, stroke_hw=(16, 16)):
    """One-time host prep: conv->matmul lowering (stored bf16), lane-dense
    channel-broadcast matrices R^T, host-pre-broadcast beta, merged + 128-lane
    padded mean/var head."""
    ops = {"conv": []}
    h, w_sp = stroke_hw
    for (w, _b, gamma, beta) in params["conv"]:
        cout = w.shape[3]
        m, ho, wo = _conv_as_matmul(w, h, w_sp)
        hw = ho * wo
        rt = np.zeros((cout, cout * hw), np.float32)      # lane-dense R^T
        for c in range(cout):
            rt[c, c * hw:(c + 1) * hw] = 1.0
        beta_full = jnp.repeat(beta, hw).reshape(1, cout * hw)   # host broadcast
        ops["conv"].append((m.astype(MXU_WEIGHT_DTYPE),
                            jnp.asarray(rt),
                            gamma.reshape(1, cout).astype(jnp.float32),
                            beta_full.astype(jnp.float32)))
        h, w_sp = ho, wo

    tw, tb = params["traj"]
    ops["traj_w"] = tw.astype(MXU_WEIGHT_DTYPE)
    ops["traj_b"] = tb.reshape(1, -1).astype(jnp.float32)

    wm, bm = params["mean_fc"]
    wv, bv = params["var_fc"]
    conv_flat = params["conv"][-1][0].shape[3] * h * w_sp        # C_last*Ho*Wo
    head_w = jnp.concatenate([wm, wv], axis=1)                   # (feat, 2*latent)
    head_b = jnp.concatenate([bm, bv]).reshape(1, -1)
    pad_cols = -head_w.shape[1] % 128                            # pad to 128 lanes
    head_w = jnp.pad(head_w, ((0, 0), (0, pad_cols)))
    head_b = jnp.pad(head_b, ((0, 0), (0, pad_cols)))
    ops["head_w_conv"] = head_w[:conv_flat].astype(MXU_WEIGHT_DTYPE)
    ops["head_w_traj"] = head_w[conv_flat:].astype(MXU_WEIGHT_DTYPE)
    ops["head_b"] = head_b.astype(jnp.float32)
    return ops


# ------------------------------- forward call -------------------------------- #

def _zero_map2(i):
    return (0, 0)


@functools.partial(jax.jit, static_argnames=("latent_dim",))
def encoder_forward(operands, stroke_nchw, trajectory, latent_dim):
    B = stroke_nchw.shape[0]
    B_pad = ((B + 7) // 8) * 8                       # sublane-full batch

    # NCHW flatten (C=1 for the stroke input) -> exactly the layout the first
    # pre-lowered conv matrix expects; zero-pad batch rows to B_pad.
    x0 = stroke_nchw.astype(jnp.float32).reshape(B, -1)
    tr = trajectory.astype(jnp.float32).reshape(B, -1)
    x0 = jnp.pad(x0, ((0, B_pad - B), (0, 0)))
    tr = jnp.pad(tr, ((0, B_pad - B), (0, 0)))

    inputs = [x0, tr]
    samples = []
    for (m, rt, g, bf) in operands["conv"]:
        inputs.extend([m, rt, g, bf])
        hw = rt.shape[1] // rt.shape[0]              # Ho * Wo
        samples.append(B * hw)                       # real-row sample count
    inputs.extend([operands["traj_w"], operands["traj_b"],
                   operands["head_w_conv"], operands["head_w_traj"],
                   operands["head_b"]])

    out_cols = operands["head_b"].shape[1]           # 2*latent padded to 128
    kernel = _make_encoder_kernel(len(operands["conv"]), tuple(samples), B)

    out = pl.pallas_call(
        kernel,
        out_shape=jax.ShapeDtypeStruct((B_pad, out_cols), jnp.float32),
        grid=(1,),
        in_specs=[pl.BlockSpec(tuple(a.shape), _zero_map2) for a in inputs],
        out_specs=pl.BlockSpec((B_pad, out_cols), _zero_map2),
        compiler_params=pltpu.CompilerParams(dimension_semantics=("arbitrary",)),
    )(*inputs)

    return out[:B, :latent_dim], out[:B, latent_dim:2 * latent_dim]


# ---------------------------------- main ------------------------------------- #

if __name__ == "__main__":
    stroke_hidden_dims = [8, 16, 32]   # 3 stride-2 convs: 16x16 -> 8 -> 4 -> 2
    traj_hidden_dim = 32
    latent_dim = 16
    batch = 2

    key = jax.random.PRNGKey(0)
    key, k_params, k_stroke, k_traj = jax.random.split(key, 4)

    params = init_params(k_params, stroke_hidden_dims, traj_hidden_dim, latent_dim)
    operands = build_kernel_operands(params, stroke_hw=(16, 16))

    stroke = jax.random.normal(k_stroke, (batch, 1, 16, 16), jnp.float32)   # NCHW
    trajectory = jax.random.normal(k_traj, (batch, 8, 3), jnp.float32)      # -> 24

    mean, logvar = encoder_forward(operands, stroke, trajectory, latent_dim)
    jax.block_until_ready((mean, logvar))

    assert mean.shape == (batch, latent_dim) and logvar.shape == (batch, latent_dim)
    assert bool(jnp.all(jnp.isfinite(mean))) and bool(jnp.all(jnp.isfinite(logvar)))
    print("KERNEL_OK")
</pallas_src>

<mosaic_0001>
module attributes {stable_mosaic.version = 11 : i64} {
  func.func @kernel(%arg0: i32, %arg1: memref<8x256xf32, #tpu.memory_space<vmem>>, %arg2: memref<8x24xf32, #tpu.memory_space<vmem>>, %arg3: memref<256x512xbf16, #tpu.memory_space<vmem>>, %arg4: memref<8x512xf32, #tpu.memory_space<vmem>>, %arg5: memref<1x8xf32, #tpu.memory_space<vmem>>, %arg6: memref<1x512xf32, #tpu.memory_space<vmem>>, %arg7: memref<512x256xbf16, #tpu.memory_space<vmem>>, %arg8: memref<16x256xf32, #tpu.memory_space<vmem>>, %arg9: memref<1x16xf32, #tpu.memory_space<vmem>>, %arg10: memref<1x256xf32, #tpu.memory_space<vmem>>, %arg11: memref<256x128xbf16, #tpu.memory_space<vmem>>, %arg12: memref<32x128xf32, #tpu.memory_space<vmem>>, %arg13: memref<1x32xf32, #tpu.memory_space<vmem>>, %arg14: memref<1x128xf32, #tpu.memory_space<vmem>>, %arg15: memref<24x32xbf16, #tpu.memory_space<vmem>>, %arg16: memref<1x32xf32, #tpu.memory_space<vmem>>, %arg17: memref<128x128xbf16, #tpu.memory_space<vmem>>, %arg18: memref<32x128xbf16, #tpu.memory_space<vmem>>, %arg19: memref<1x128xf32, #tpu.memory_space<vmem>>, %arg20: memref<8x128xf32, #tpu.memory_space<vmem>>) attributes {dimension_semantics = [#tpu.dimension_semantics<arbitrary>], iteration_bounds = array<i64: 1>, scalar_prefetch = 0 : i64, scratch_operands = 0 : i64, tpu.core_type = #tpu.core_type<tc>, window_params = [{pipeline_mode = #tpu.pipeline_mode<synchronous>, transform_indices = @transform_0, window_bounds = array<i64: 8, 256>}, {pipeline_mode = #tpu.pipeline_mode<synchronous>, transform_indices = @transform_1, window_bounds = array<i64: 8, 24>}, {pipeline_mode = #tpu.pipeline_mode<synchronous>, transform_indices = @transform_2, window_bounds = array<i64: 256, 512>}, {pipeline_mode = #tpu.pipeline_mode<synchronous>, transform_indices = @transform_3, window_bounds = array<i64: 8, 512>}, {pipeline_mode = #tpu.pipeline_mode<synchronous>, transform_indices = @transform_4, window_bounds = array<i64: 1, 8>}, {pipeline_mode = #tpu.pipeline_mode<synchronous>, transform_indices = @transform_5, window_bounds = array<i64: 1, 512>}, {pipeline_mode = #tpu.pipeline_mode<synchronous>, transform_indices = @transform_6, window_bounds = array<i64: 512, 256>}, {pipeline_mode = #tpu.pipeline_mode<synchronous>, transform_indices = @transform_7, window_bounds = array<i64: 16, 256>}, {pipeline_mode = #tpu.pipeline_mode<synchronous>, transform_indices = @transform_8, window_bounds = array<i64: 1, 16>}, {pipeline_mode = #tpu.pipeline_mode<synchronous>, transform_indices = @transform_9, window_bounds = array<i64: 1, 256>}, {pipeline_mode = #tpu.pipeline_mode<synchronous>, transform_indices = @transform_10, window_bounds = array<i64: 256, 128>}, {pipeline_mode = #tpu.pipeline_mode<synchronous>, transform_indices = @transform_11, window_bounds = array<i64: 32, 128>}, {pipeline_mode = #tpu.pipeline_mode<synchronous>, transform_indices = @transform_12, window_bounds = array<i64: 1, 32>}, {pipeline_mode = #tpu.pipeline_mode<synchronous>, transform_indices = @transform_13, window_bounds = array<i64: 1, 128>}, {pipeline_mode = #tpu.pipeline_mode<synchronous>, transform_indices = @transform_14, window_bounds = array<i64: 24, 32>}, {pipeline_mode = #tpu.pipeline_mode<synchronous>, transform_indices = @transform_15, window_bounds = array<i64: 1, 32>}, {pipeline_mode = #tpu.pipeline_mode<synchronous>, transform_indices = @transform_16, window_bounds = array<i64: 128, 128>}, {pipeline_mode = #tpu.pipeline_mode<synchronous>, transform_indices = @transform_17, window_bounds = array<i64: 32, 128>}, {pipeline_mode = #tpu.pipeline_mode<synchronous>, transform_indices = @transform_18, window_bounds = array<i64: 1, 128>}, {pipeline_mode = #tpu.pipeline_mode<synchronous>, transform_indices = @transform_19, window_bounds = array<i64: 8, 128>}]} {
    %0 = tpu.iota {dimensions = array<i32: 0>} : vector<8x1xi32>
    %c2_i32 = arith.constant 2 : i32
    %1 = vector.broadcast %c2_i32 : i32 to vector<8x1xi32>
    %2 = arith.cmpi slt, %0, %1 : vector<8x1xi32>
    %3 = arith.extui %2 : vector<8x1xi1> to vector<8x1xi32>
    %4 = arith.sitofp %3 : vector<8x1xi32> to vector<8x1xf32>
    %c0 = arith.constant 0 : index
    %c0_0 = arith.constant 0 : index
    %5 = vector.load %arg1[%c0, %c0_0] : memref<8x256xf32, #tpu.memory_space<vmem>>, vector<8x256xf32>
    %c0_1 = arith.constant 0 : index
    %c0_2 = arith.constant 0 : index
    %6 = vector.load %arg4[%c0_1, %c0_2] : memref<8x512xf32, #tpu.memory_space<vmem>>, vector<8x512xf32>
    %7 = arith.truncf %5 : vector<8x256xf32> to vector<8x256xbf16>
    %c0_3 = arith.constant 0 : index
    %c0_4 = arith.constant 0 : index
    %8 = vector.load %arg3[%c0_3, %c0_4] : memref<256x512xbf16, #tpu.memory_space<vmem>>, vector<256x512xbf16>
    %cst = arith.constant dense<0.000000e+00> : vector<8x512xf32>
    %9 = tpu.matmul %7, %8, %cst {dimension_numbers = #tpu.dot_dimension_numbers<[1], [0], [0], [1], [0, 0, 1, 1], [], []>} : vector<8x256xbf16>, vector<256x512xbf16>, vector<8x512xf32> -> vector<8x512xf32>
    %10 = vector.broadcast %4 : vector<8x1xf32> to vector<8x512xf32>
    %11 = arith.mulf %9, %10 : vector<8x512xf32>
    %cst_5 = arith.constant dense<0.000000e+00> : vector<512xf32>
    %12 = vector.multi_reduction <add>, %11, %cst_5 [0] : vector<8x512xf32> to vector<512xf32>
    %13 = vector.shape_cast %12 : vector<512xf32> to vector<1x512xf32>
    %cst_6 = arith.constant dense<0.000000e+00> : vector<1x8xf32>
    %14 = tpu.matmul %13, %6, %cst_6 {dimension_numbers = #tpu.dot_dimension_numbers<[1], [1], [0], [0], [0, 0, 1, 0], [], []>} : vector<1x512xf32>, vector<8x512xf32>, vector<1x8xf32> -> vector<1x8xf32>
    %cst_7 = arith.constant 7.812500e-03 : f32
    %15 = vector.broadcast %cst_7 : f32 to vector<1x8xf32>
    %16 = arith.mulf %14, %15 : vector<1x8xf32>
    %cst_8 = arith.constant dense<0.000000e+00> : vector<1x512xf32>
    %17 = tpu.matmul %16, %6, %cst_8 {dimension_numbers = #tpu.dot_dimension_numbers<[1], [0], [0], [1], [0, 0, 1, 1], [], []>} : vector<1x8xf32>, vector<8x512xf32>, vector<1x512xf32> -> vector<1x512xf32>
    %18 = vector.broadcast %17 : vector<1x512xf32> to vector<8x512xf32>
    %19 = arith.subf %9, %18 : vector<8x512xf32>
    %20 = arith.mulf %19, %19 : vector<8x512xf32>
    %21 = vector.broadcast %4 : vector<8x1xf32> to vector<8x512xf32>
    %22 = arith.mulf %20, %21 : vector<8x512xf32>
    %cst_9 = arith.constant dense<0.000000e+00> : vector<512xf32>
    %23 = vector.multi_reduction <add>, %22, %cst_9 [0] : vector<8x512xf32> to vector<512xf32>
    %24 = vector.shape_cast %23 : vector<512xf32> to vector<1x512xf32>
    %cst_10 = arith.constant dense<0.000000e+00> : vector<1x8xf32>
    %25 = tpu.matmul %24, %6, %cst_10 {dimension_numbers = #tpu.dot_dimension_numbers<[1], [1], [0], [0], [0, 0, 1, 0], [], []>} : vector<1x512xf32>, vector<8x512xf32>, vector<1x8xf32> -> vector<1x8xf32>
    %cst_11 = arith.constant 7.812500e-03 : f32
    %26 = vector.broadcast %cst_11 : f32 to vector<1x8xf32>
    %27 = arith.mulf %25, %26 : vector<1x8xf32>
    %c0_12 = arith.constant 0 : index
    %c0_13 = arith.constant 0 : index
    %28 = vector.load %arg5[%c0_12, %c0_13] : memref<1x8xf32, #tpu.memory_space<vmem>>, vector<1x8xf32>
    %cst_14 = arith.constant 9.99999974E-6 : f32
    %29 = vector.broadcast %cst_14 : f32 to vector<1x8xf32>
    %30 = arith.addf %27, %29 : vector<1x8xf32>
    %31 = math.rsqrt %30 : vector<1x8xf32>
    %32 = arith.mulf %28, %31 : vector<1x8xf32>
    %cst_15 = arith.constant dense<0.000000e+00> : vector<1x512xf32>
    %33 = tpu.matmul %32, %6, %cst_15 {dimension_numbers = #tpu.dot_dimension_numbers<[1], [0], [0], [1], [0, 0, 1, 1], [], []>} : vector<1x8xf32>, vector<8x512xf32>, vector<1x512xf32> -> vector<1x512xf32>
    %34 = vector.broadcast %33 : vector<1x512xf32> to vector<8x512xf32>
    %35 = arith.mulf %19, %34 : vector<8x512xf32>
    %c0_16 = arith.constant 0 : index
    %c0_17 = arith.constant 0 : index
    %36 = vector.load %arg6[%c0_16, %c0_17] : memref<1x512xf32, #tpu.memory_space<vmem>>, vector<1x512xf32>
    %37 = vector.broadcast %36 : vector<1x512xf32> to vector<8x512xf32>
    %38 = arith.addf %35, %37 : vector<8x512xf32>
    %cst_18 = arith.constant 0.000000e+00 : f32
    %39 = vector.broadcast %cst_18 : f32 to vector<8x512xf32>
    %40 = arith.cmpf oge, %38, %39 : vector<8x512xf32>
    %cst_19 = arith.constant 0.00999999977 : f32
    %41 = vector.broadcast %cst_19 : f32 to vector<8x512xf32>
    %42 = arith.mulf %41, %38 : vector<8x512xf32>
    %43 = arith.select %40, %38, %42 : vector<8x512xi1>, vector<8x512xf32>
    %c0_20 = arith.constant 0 : index
    %c0_21 = arith.constant 0 : index
    %44 = vector.load %arg8[%c0_20, %c0_21] : memref<16x256xf32, #tpu.memory_space<vmem>>, vector<16x256xf32>
    %45 = arith.truncf %43 : vector<8x512xf32> to vector<8x512xbf16>
    %c0_22 = arith.constant 0 : index
    %c0_23 = arith.constant 0 : index
    %46 = vector.load %arg7[%c0_22, %c0_23] : memref<512x256xbf16, #tpu.memory_space<vmem>>, vector<512x256xbf16>
    %cst_24 = arith.constant dense<0.000000e+00> : vector<8x256xf32>
    %47 = tpu.matmul %45, %46, %cst_24 {dimension_numbers = #tpu.dot_dimension_numbers<[1], [0], [0], [1], [0, 0, 1, 1], [], []>} : vector<8x512xbf16>, vector<512x256xbf16>, vector<8x256xf32> -> vector<8x256xf32>
    %48 = vector.broadcast %4 : vector<8x1xf32> to vector<8x256xf32>
    %49 = arith.mulf %47, %48 : vector<8x256xf32>
    %cst_25 = arith.constant dense<0.000000e+00> : vector<256xf32>
    %50 = vector.multi_reduction <add>, %49, %cst_25 [0] : vector<8x256xf32> to vector<256xf32>
    %51 = vector.shape_cast %50 : vector<256xf32> to vector<1x256xf32>
    %cst_26 = arith.constant dense<0.000000e+00> : vector<1x16xf32>
    %52 = tpu.matmul %51, %44, %cst_26 {dimension_numbers = #tpu.dot_dimension_numbers<[1], [1], [0], [0], [0, 0, 1, 0], [], []>} : vector<1x256xf32>, vector<16x256xf32>, vector<1x16xf32> -> vector<1x16xf32>
    %cst_27 = arith.constant 3.125000e-02 : f32
    %53 = vector.broadcast %cst_27 : f32 to vector<1x16xf32>
    %54 = arith.mulf %52, %53 : vector<1x16xf32>
    %cst_28 = arith.constant dense<0.000000e+00> : vector<1x256xf32>
    %55 = tpu.matmul %54, %44, %cst_28 {dimension_numbers = #tpu.dot_dimension_numbers<[1], [0], [0], [1], [0, 0, 1, 1], [], []>} : vector<1x16xf32>, vector<16x256xf32>, vector<1x256xf32> -> vector<1x256xf32>
    %56 = vector.broadcast %55 : vector<1x256xf32> to vector<8x256xf32>
    %57 = arith.subf %47, %56 : vector<8x256xf32>
    %58 = arith.mulf %57, %57 : vector<8x256xf32>
    %59 = vector.broadcast %4 : vector<8x1xf32> to vector<8x256xf32>
    %60 = arith.mulf %58, %59 : vector<8x256xf32>
    %cst_29 = arith.constant dense<0.000000e+00> : vector<256xf32>
    %61 = vector.multi_reduction <add>, %60, %cst_29 [0] : vector<8x256xf32> to vector<256xf32>
    %62 = vector.shape_cast %61 : vector<256xf32> to vector<1x256xf32>
    %cst_30 = arith.constant dense<0.000000e+00> : vector<1x16xf32>
    %63 = tpu.matmul %62, %44, %cst_30 {dimension_numbers = #tpu.dot_dimension_numbers<[1], [1], [0], [0], [0, 0, 1, 0], [], []>} : vector<1x256xf32>, vector<16x256xf32>, vector<1x16xf32> -> vector<1x16xf32>
    %cst_31 = arith.constant 3.125000e-02 : f32
    %64 = vector.broadcast %cst_31 : f32 to vector<1x16xf32>
    %65 = arith.mulf %63, %64 : vector<1x16xf32>
    %c0_32 = arith.constant 0 : index
    %c0_33 = arith.constant 0 : index
    %66 = vector.load %arg9[%c0_32, %c0_33] : memref<1x16xf32, #tpu.memory_space<vmem>>, vector<1x16xf32>
    %cst_34 = arith.constant 9.99999974E-6 : f32
    %67 = vector.broadcast %cst_34 : f32 to vector<1x16xf32>
    %68 = arith.addf %65, %67 : vector<1x16xf32>
    %69 = math.rsqrt %68 : vector<1x16xf32>
    %70 = arith.mulf %66, %69 : vector<1x16xf32>
    %cst_35 = arith.constant dense<0.000000e+00> : vector<1x256xf32>
    %71 = tpu.matmul %70, %44, %cst_35 {dimension_numbers = #tpu.dot_dimension_numbers<[1], [0], [0], [1], [0, 0, 1, 1], [], []>} : vector<1x16xf32>, vector<16x256xf32>, vector<1x256xf32> -> vector<1x256xf32>
    %72 = vector.broadcast %71 : vector<1x256xf32> to vector<8x256xf32>
    %73 = arith.mulf %57, %72 : vector<8x256xf32>
    %c0_36 = arith.constant 0 : index
    %c0_37 = arith.constant 0 : index
    %74 = vector.load %arg10[%c0_36, %c0_37] : memref<1x256xf32, #tpu.memory_space<vmem>>, vector<1x256xf32>
    %75 = vector.broadcast %74 : vector<1x256xf32> to vector<8x256xf32>
    %76 = arith.addf %73, %75 : vector<8x256xf32>
    %cst_38 = arith.constant 0.000000e+00 : f32
    %77 = vector.broadcast %cst_38 : f32 to vector<8x256xf32>
    %78 = arith.cmpf oge, %76, %77 : vector<8x256xf32>
    %cst_39 = arith.constant 0.00999999977 : f32
    %79 = vector.broadcast %cst_39 : f32 to vector<8x256xf32>
    %80 = arith.mulf %79, %76 : vector<8x256xf32>
    %81 = arith.select %78, %76, %80 : vector<8x256xi1>, vector<8x256xf32>
    %c0_40 = arith.constant 0 : index
    %c0_41 = arith.constant 0 : index
    %82 = vector.load %arg12[%c0_40, %c0_41] : memref<32x128xf32, #tpu.memory_space<vmem>>, vector<32x128xf32>
    %83 = arith.truncf %81 : vector<8x256xf32> to vector<8x256xbf16>
    %c0_42 = arith.constant 0 : index
    %c0_43 = arith.constant 0 : index
    %84 = vector.load %arg11[%c0_42, %c0_43] : memref<256x128xbf16, #tpu.memory_space<vmem>>, vector<256x128xbf16>
    %cst_44 = arith.constant dense<0.000000e+00> : vector<8x128xf32>
    %85 = tpu.matmul %83, %84, %cst_44 {dimension_numbers = #tpu.dot_dimension_numbers<[1], [0], [0], [1], [0, 0, 1, 1], [], []>} : vector<8x256xbf16>, vector<256x128xbf16>, vector<8x128xf32> -> vector<8x128xf32>
    %86 = vector.broadcast %4 : vector<8x1xf32> to vector<8x128xf32>
    %87 = arith.mulf %85, %86 : vector<8x128xf32>
    %cst_45 = arith.constant dense<0.000000e+00> : vector<128xf32>
    %88 = vector.multi_reduction <add>, %87, %cst_45 [0] : vector<8x128xf32> to vector<128xf32>
    %89 = vector.shape_cast %88 : vector<128xf32> to vector<1x128xf32>
    %cst_46 = arith.constant dense<0.000000e+00> : vector<1x32xf32>
    %90 = tpu.matmul %89, %82, %cst_46 {dimension_numbers = #tpu.dot_dimension_numbers<[1], [1], [0], [0], [0, 0, 1, 0], [], []>} : vector<1x128xf32>, vector<32x128xf32>, vector<1x32xf32> -> vector<1x32xf32>
    %cst_47 = arith.constant 1.250000e-01 : f32
    %91 = vector.broadcast %cst_47 : f32 to vector<1x32xf32>
    %92 = arith.mulf %90, %91 : vector<1x32xf32>
    %cst_48 = arith.constant dense<0.000000e+00> : vector<1x128xf32>
    %93 = tpu.matmul %92, %82, %cst_48 {dimension_numbers = #tpu.dot_dimension_numbers<[1], [0], [0], [1], [0, 0, 1, 1], [], []>} : vector<1x32xf32>, vector<32x128xf32>, vector<1x128xf32> -> vector<1x128xf32>
    %94 = vector.broadcast %93 : vector<1x128xf32> to vector<8x128xf32>
    %95 = arith.subf %85, %94 : vector<8x128xf32>
    %96 = arith.mulf %95, %95 : vector<8x128xf32>
    %97 = vector.broadcast %4 : vector<8x1xf32> to vector<8x128xf32>
    %98 = arith.mulf %96, %97 : vector<8x128xf32>
    %cst_49 = arith.constant dense<0.000000e+00> : vector<128xf32>
    %99 = vector.multi_reduction <add>, %98, %cst_49 [0] : vector<8x128xf32> to vector<128xf32>
    %100 = vector.shape_cast %99 : vector<128xf32> to vector<1x128xf32>
    %cst_50 = arith.constant dense<0.000000e+00> : vector<1x32xf32>
    %101 = tpu.matmul %100, %82, %cst_50 {dimension_numbers = #tpu.dot_dimension_numbers<[1], [1], [0], [0], [0, 0, 1, 0], [], []>} : vector<1x128xf32>, vector<32x128xf32>, vector<1x32xf32> -> vector<1x32xf32>
    %cst_51 = arith.constant 1.250000e-01 : f32
    %102 = vector.broadcast %cst_51 : f32 to vector<1x32xf32>
    %103 = arith.mulf %101, %102 : vector<1x32xf32>
    %c0_52 = arith.constant 0 : index
    %c0_53 = arith.constant 0 : index
    %104 = vector.load %arg13[%c0_52, %c0_53] : memref<1x32xf32, #tpu.memory_space<vmem>>, vector<1x32xf32>
    %cst_54 = arith.constant 9.99999974E-6 : f32
    %105 = vector.broadcast %cst_54 : f32 to vector<1x32xf32>
    %106 = arith.addf %103, %105 : vector<1x32xf32>
    %107 = math.rsqrt %106 : vector<1x32xf32>
    %108 = arith.mulf %104, %107 : vector<1x32xf32>
    %cst_55 = arith.constant dense<0.000000e+00> : vector<1x128xf32>
    %109 = tpu.matmul %108, %82, %cst_55 {dimension_numbers = #tpu.dot_dimension_numbers<[1], [0], [0], [1], [0, 0, 1, 1], [], []>} : vector<1x32xf32>, vector<32x128xf32>, vector<1x128xf32> -> vector<1x128xf32>
    %110 = vector.broadcast %109 : vector<1x128xf32> to vector<8x128xf32>
    %111 = arith.mulf %95, %110 : vector<8x128xf32>
    %c0_56 = arith.constant 0 : index
    %c0_57 = arith.constant 0 : index
    %112 = vector.load %arg14[%c0_56, %c0_57] : memref<1x128xf32, #tpu.memory_space<vmem>>, vector<1x128xf32>
    %113 = vector.broadcast %112 : vector<1x128xf32> to vector<8x128xf32>
    %114 = arith.addf %111, %113 : vector<8x128xf32>
    %cst_58 = arith.constant 0.000000e+00 : f32
    %115 = vector.broadcast %cst_58 : f32 to vector<8x128xf32>
    %116 = arith.cmpf oge, %114, %115 : vector<8x128xf32>
    %cst_59 = arith.constant 0.00999999977 : f32
    %117 = vector.broadcast %cst_59 : f32 to vector<8x128xf32>
    %118 = arith.mulf %117, %114 : vector<8x128xf32>
    %119 = arith.select %116, %114, %118 : vector<8x128xi1>, vector<8x128xf32>
    %c0_60 = arith.constant 0 : index
    %c0_61 = arith.constant 0 : index
    %120 = vector.load %arg2[%c0_60, %c0_61] : memref<8x24xf32, #tpu.memory_space<vmem>>, vector<8x24xf32>
    %121 = arith.truncf %120 : vector<8x24xf32> to vector<8x24xbf16>
    %c0_62 = arith.constant 0 : index
    %c0_63 = arith.constant 0 : index
    %122 = vector.load %arg15[%c0_62, %c0_63] : memref<24x32xbf16, #tpu.memory_space<vmem>>, vector<24x32xbf16>
    %cst_64 = arith.constant dense<0.000000e+00> : vector<8x32xf32>
    %123 = tpu.matmul %121, %122, %cst_64 {dimension_numbers = #tpu.dot_dimension_numbers<[1], [0], [0], [1], [0, 0, 1, 1], [], []>} : vector<8x24xbf16>, vector<24x32xbf16>, vector<8x32xf32> -> vector<8x32xf32>
    %c0_65 = arith.constant 0 : index
    %c0_66 = arith.constant 0 : index
    %124 = vector.load %arg16[%c0_65, %c0_66] : memref<1x32xf32, #tpu.memory_space<vmem>>, vector<1x32xf32>
    %125 = vector.broadcast %124 : vector<1x32xf32> to vector<8x32xf32>
    %126 = arith.addf %123, %125 : vector<8x32xf32>
    %cst_67 = arith.constant 0.000000e+00 : f32
    %127 = vector.broadcast %cst_67 : f32 to vector<8x32xf32>
    %128 = arith.cmpf oge, %126, %127 : vector<8x32xf32>
    %cst_68 = arith.constant 0.00999999977 : f32
    %129 = vector.broadcast %cst_68 : f32 to vector<8x32xf32>
    %130 = arith.mulf %129, %126 : vector<8x32xf32>
    %131 = arith.select %128, %126, %130 : vector<8x32xi1>, vector<8x32xf32>
    %132 = arith.truncf %119 : vector<8x128xf32> to vector<8x128xbf16>
    %c0_69 = arith.constant 0 : index
    %c0_70 = arith.constant 0 : index
    %133 = vector.load %arg17[%c0_69, %c0_70] : memref<128x128xbf16, #tpu.memory_space<vmem>>, vector<128x128xbf16>
    %cst_71 = arith.constant dense<0.000000e+00> : vector<8x128xf32>
    %134 = tpu.matmul %132, %133, %cst_71 {dimension_numbers = #tpu.dot_dimension_numbers<[1], [0], [0], [1], [0, 0, 1, 1], [], []>} : vector<8x128xbf16>, vector<128x128xbf16>, vector<8x128xf32> -> vector<8x128xf32>
    %135 = arith.truncf %131 : vector<8x32xf32> to vector<8x32xbf16>
    %c0_72 = arith.constant 0 : index
    %c0_73 = arith.constant 0 : index
    %136 = vector.load %arg18[%c0_72, %c0_73] : memref<32x128xbf16, #tpu.memory_space<vmem>>, vector<32x128xbf16>
    %cst_74 = arith.constant dense<0.000000e+00> : vector<8x128xf32>
    %137 = tpu.matmul %135, %136, %cst_74 {dimension_numbers = #tpu.dot_dimension_numbers<[1], [0], [0], [1], [0, 0, 1, 1], [], []>} : vector<8x32xbf16>, vector<32x128xbf16>, vector<8x128xf32> -> vector<8x128xf32>
    %138 = arith.addf %134, %137 : vector<8x128xf32>
    %c0_75 = arith.constant 0 : index
    %c0_76 = arith.constant 0 : index
    %139 = vector.load %arg19[%c0_75, %c0_76] : memref<1x128xf32, #tpu.memory_space<vmem>>, vector<1x128xf32>
    %140 = vector.broadcast %139 : vector<1x128xf32> to vector<8x128xf32>
    %141 = arith.addf %138, %140 : vector<8x128xf32>
    %c0_77 = arith.constant 0 : index
    %c0_78 = arith.constant 0 : index
    %142 = vector.load %arg20[%c0_77, %c0_78] : memref<8x128xf32, #tpu.memory_space<vmem>>, vector<8x128xf32>
    tpu.vector_store %arg20[%c0_77, %c0_78], %141 {strides = array<i32>} : memref<8x128xf32, #tpu.memory_space<vmem>>, vector<8x128xf32>,
    return
  }
  func.func @transform_0(%arg0: i32) -> (i32, i32) {
    %c0_i32 = arith.constant 0 : i32
    %c0_i32_0 = arith.constant 0 : i32
    %c0_i32_1 = arith.constant 0 : i32
    return %c0_i32, %c0_i32_0 : i32, i32
  }
  func.func @transform_1(%arg0: i32) -> (i32, i32) {
    %c0_i32 = arith.constant 0 : i32
    %c0_i32_0 = arith.constant 0 : i32
    %c0_i32_1 = arith.constant 0 : i32
    return %c0_i32, %c0_i32_0 : i32, i32
  }
  func.func @transform_2(%arg0: i32) -> (i32, i32) {
    %c0_i32 = arith.constant 0 : i32
    %c0_i32_0 = arith.constant 0 : i32
    %c0_i32_1 = arith.constant 0 : i32
    return %c0_i32, %c0_i32_0 : i32, i32
  }
  func.func @transform_3(%arg0: i32) -> (i32, i32) {
    %c0_i32 = arith.constant 0 : i32
    %c0_i32_0 = arith.constant 0 : i32
    %c0_i32_1 = arith.constant 0 : i32
    return %c0_i32, %c0_i32_0 : i32, i32
  }
  func.func @transform_4(%arg0: i32) -> (i32, i32) {
    %c0_i32 = arith.constant 0 : i32
    %c0_i32_0 = arith.constant 0 : i32
    %c0_i32_1 = arith.constant 0 : i32
    return %c0_i32, %c0_i32_0 : i32, i32
  }
  func.func @transform_5(%arg0: i32) -> (i32, i32) {
    %c0_i32 = arith.constant 0 : i32
    %c0_i32_0 = arith.constant 0 : i32
    %c0_i32_1 = arith.constant 0 : i32
    return %c0_i32, %c0_i32_0 : i32, i32
  }
  func.func @transform_6(%arg0: i32) -> (i32, i32) {
    %c0_i32 = arith.constant 0 : i32
    %c0_i32_0 = arith.constant 0 : i32
    %c0_i32_1 = arith.constant 0 : i32
    return %c0_i32, %c0_i32_0 : i32, i32
  }
  func.func @transform_7(%arg0: i32) -> (i32, i32) {
    %c0_i32 = arith.constant 0 : i32
    %c0_i32_0 = arith.constant 0 : i32
    %c0_i32_1 = arith.constant 0 : i32
    return %c0_i32, %c0_i32_0 : i32, i32
  }
  func.func @transform_8(%arg0: i32) -> (i32, i32) {
    %c0_i32 = arith.constant 0 : i32
    %c0_i32_0 = arith.constant 0 : i32
    %c0_i32_1 = arith.constant 0 : i32
    return %c0_i32, %c0_i32_0 : i32, i32
  }
  func.func @transform_9(%arg0: i32) -> (i32, i32) {
    %c0_i32 = arith.constant 0 : i32
    %c0_i32_0 = arith.constant 0 : i32
    %c0_i32_1 = arith.constant 0 : i32
    return %c0_i32, %c0_i32_0 : i32, i32
  }
  func.func @transform_10(%arg0: i32) -> (i32, i32) {
    %c0_i32 = arith.constant 0 : i32
    %c0_i32_0 = arith.constant 0 : i32
    %c0_i32_1 = arith.constant 0 : i32
    return %c0_i32, %c0_i32_0 : i32, i32
  }
  func.func @transform_11(%arg0: i32) -> (i32, i32) {
    %c0_i32 = arith.constant 0 : i32
    %c0_i32_0 = arith.constant 0 : i32
    %c0_i32_1 = arith.constant 0 : i32
    return %c0_i32, %c0_i32_0 : i32, i32
  }
  func.func @transform_12(%arg0: i32) -> (i32, i32) {
    %c0_i32 = arith.constant 0 : i32
    %c0_i32_0 = arith.constant 0 : i32
    %c0_i32_1 = arith.constant 0 : i32
    return %c0_i32, %c0_i32_0 : i32, i32
  }
  func.func @transform_13(%arg0: i32) -> (i32, i32) {
    %c0_i32 = arith.constant 0 : i32
    %c0_i32_0 = arith.constant 0 : i32
    %c0_i32_1 = arith.constant 0 : i32
    return %c0_i32, %c0_i32_0 : i32, i32
  }
  func.func @transform_14(%arg0: i32) -> (i32, i32) {
    %c0_i32 = arith.constant 0 : i32
    %c0_i32_0 = arith.constant 0 : i32
    %c0_i32_1 = arith.constant 0 : i32
    return %c0_i32, %c0_i32_0 : i32, i32
  }
  func.func @transform_15(%arg0: i32) -> (i32, i32) {
    %c0_i32 = arith.constant 0 : i32
    %c0_i32_0 = arith.constant 0 : i32
    %c0_i32_1 = arith.constant 0 : i32
    return %c0_i32, %c0_i32_0 : i32, i32
  }
  func.func @transform_16(%arg0: i32) -> (i32, i32) {
    %c0_i32 = arith.constant 0 : i32
    %c0_i32_0 = arith.constant 0 : i32
    %c0_i32_1 = arith.constant 0 : i32
    return %c0_i32, %c0_i32_0 : i32, i32
  }
  func.func @transform_17(%arg0: i32) -> (i32, i32) {
    %c0_i32 = arith.constant 0 : i32
    %c0_i32_0 = arith.constant 0 : i32
    %c0_i32_1 = arith.constant 0 : i32
    return %c0_i32, %c0_i32_0 : i32, i32
  }
  func.func @transform_18(%arg0: i32) -> (i32, i32) {
    %c0_i32 = arith.constant 0 : i32
    %c0_i32_0 = arith.constant 0 : i32
    %c0_i32_1 = arith.constant 0 : i32
    return %c0_i32, %c0_i32_0 : i32, i32
  }
  func.func @transform_19(%arg0: i32) -> (i32, i32) {
    %c0_i32 = arith.constant 0 : i32
    %c0_i32_0 = arith.constant 0 : i32
    %c0_i32_1 = arith.constant 0 : i32
    return %c0_i32, %c0_i32_0 : i32, i32
  }
}

</mosaic_0001>

<bundles_post_ra>
// kernel: encoder_forward.1
= control target key start
LH: loop header
LB: loop body
LE: loop exit
PB: predicated region body
PF: predicated region fallthrough
CT: control target
= control target key end

     0   :  { %s4580_s0 = inlined_call_operand.vmem [shape: f32[8,256], index: 0, kind: input, shape index: {}]   ;;  %s4581_s1 = inlined_call_operand.vmem [shape: f32[8,24], index: 1, kind: input, shape index: {}]   ;;  %s4582_s2 = inlined_call_operand.hbm [shape: bf16[256,512], index: 2, kind: input, shape index: {}]   ;;  %s4583_s3 = inlined_call_operand.vmem [shape: f32[8,512], index: 3, kind: input, shape index: {}]   ;;  %s4584_s4 = inlined_call_operand.hbm [shape: f32[1,8], index: 4, kind: input, shape index: {}]   ;;  %s4585_s5 = inlined_call_operand.hbm [shape: f32[1,512], index: 5, kind: input, shape index: {}]   ;;  %s4586_s6 = inlined_call_operand.hbm [shape: bf16[512,256], index: 6, kind: input, shape index: {}]   ;;  %s4587_s7 = inlined_call_operand.hbm [shape: f32[16,256], index: 7, kind: input, shape index: {}]   ;;  %s4588_s8 = inlined_call_operand.hbm [shape: f32[1,16], index: 8, kind: input, shape index: {}]   ;;  %s4589_s9 = inlined_call_operand.hbm [shape: f32[1,256], index: 9, kind: input, shape index: {}]   ;;  %s4590_s10 = inlined_call_operand.vmem [shape: bf16[256,128], index: 10, kind: input, shape index: {}]   ;;  %s4591_s11 = inlined_call_operand.hbm [shape: f32[32,128], index: 11, kind: input, shape index: {}]   ;;  %s4592_s12 = inlined_call_operand.hbm [shape: f32[1,32], index: 12, kind: input, shape index: {}]   ;;  %s4593_s13 = inlined_call_operand.hbm [shape: f32[1,128], index: 13, kind: input, shape index: {}]   ;;  %s4594_s14 = inlined_call_operand.hbm [shape: bf16[24,32], index: 14, kind: input, shape index: {}]   ;;  %s4595_s15 = inlined_call_operand.hbm [shape: f32[1,32], index: 15, kind: input, shape index: {}]   ;;  %s4596_s16 = inlined_call_operand.hbm [shape: bf16[128,128], index: 16, kind: input, shape index: {}]   ;;  %s4597_s17 = inlined_call_operand.hbm [shape: bf16[32,128], index: 17, kind: input, shape index: {}]   ;;  %s4598_s18 = inlined_call_operand.hbm [shape: f32[1,128], index: 18, kind: input, shape index: {}]   ;;  %s4599_s19 = inlined_call_operand.vmem [shape: f32[8,128], index: 19, kind: output, shape index: {}]  }
   0x1   :  { %4603 = sst [smem:[#allocation33_spill]] %s4580_s0 }
   0x2   :  { %4604 = sst [smem:[#allocation34_spill]] %s4581_s1 }
   0x3   :  { %4605 = sst [smem:[#allocation35_spill]] %s4582_s2 }
   0x4   :  { %4606 = sst [smem:[#allocation36_spill]] %s4583_s3 }
   0x5   :  { %24 = vsyncpa [#allocation3], 0 }
   0x6   :  { %25 = vsyncpa [#allocation5], 0 }
   0x7   :  { %26 = vsyncpa [#allocation8], 0 }
   0x8   :  { %27 = vsyncpa [#allocation11], 0 }
   0x9   :  { %28 = vsyncpa [#allocation14], 0 }
   0xa   :  { %29 = vsyncpa [#allocation17], 0 }
   0xb   :  { %30 = vsyncpa [#allocation20], 0 }
   0xc   :  { %31 = vsyncpa [#allocation23], 0  ;;  %s3995_s0 = smov [#allocation4]   ;;  %s3996_s20 = smov [#allocation7]  }
   0xd   :  { %s56_s30 = sshll.u32 %s3995_s0, 4  ;;  %s75_s21 = sshll.u32 %s3996_s20, 4  ;;  %s57_s30 = int_to_ptr.vmem [resolvable:$true] %s56_s30  ;;  %s4119_s21 = int_to_ptr.vmem [resolvable:$true] %s75_s21 }
   0xe   :  { %s3649_s2 = scalar_lea.hbm %s4584_s4, 16 }
   0xf   :  { %p3650_p0 = scmp.ne.s32.totalorder %s4584_s4, %s3649_s2  ;;  %p3653_p1 = scmp.lt.u32.totalorder %s3649_s2, %s4584_s4 }
  0x11   :  { %p3655_p2 = pnand %p3653_p1, %p3650_p0 }
  0x13   :  { %3658 = shalt.err (!%p3655_p2)
}
  0x14   :  { %s3659_s26 = scalar_lea.vmem %s57_s30, 16  ;;  %s3663_s27 = scalar_lea.vmem %s57_s30, 32 }
  0x15   :  { %p3660_p3 = scmp.ne.s32.totalorder %s57_s30, %s3659_s26  ;;  %p3664_p4 = scmp.lt.s32.totalorder %s57_s30, %s57_s30 }
  0x16   :  { %p3665_p5 = scmp.lt.s32.totalorder %s3663_s27, %s3659_s26 }
  0x18   :  { %p3666_p6 = por %p3665_p5, %p3664_p4 }
  0x1a   :  { %p3667_p7 = pnand %p3666_p6, %p3660_p3 }
  0x1c   :  { %3670 = shalt.err (!%p3667_p7)
}
  0x1d   :  { %59 = dma.hbm_to_vmem [thread:$0]  %s4584_s4, 16, %s57_s30, [#allocation5]  }
  0x1e   :  { %s3671_s1 = scalar_lea.hbm %s4586_s6, 8192 }
  0x1f   :  { %p3672_p8 = scmp.ne.s32.totalorder %s4586_s6, %s3671_s1  ;;  %p3675_p9 = scmp.lt.u32.totalorder %s3671_s1, %s4586_s6 }
  0x21   :  { %p3677_p10 = pnand %p3675_p9, %p3672_p8 }
  0x23   :  { %3680 = shalt.err (!%p3677_p10)
}
  0x24   :  { %s3681_s25 = scalar_lea.vmem %s4119_s21, 8192  ;;  %p3686_p12 = scmp.lt.s32.totalorder %s4119_s21, %s4119_s21 }
  0x25   :  { %p3682_p11 = scmp.ne.s32.totalorder %s4119_s21, %s3681_s25  ;;  %p3687_p13 = scmp.lt.s32.totalorder %s3681_s25, %s3681_s25 }
  0x27   :  { %p3688_p0 = por %p3687_p13, %p3686_p12 }
  0x29   :  { %p3689_p1 = pnand %p3688_p0, %p3682_p11 }
  0x2b   :  { %3692 = shalt.err (!%p3689_p1)
}
  0x2c   :  { %s3997_s4 = smov 128   ;;  %s3998_s30 = smov 8  }
  0x2d   :  { %81 = dma.hbm_to_vmem [thread:$0]  %s4586_s6, 8192, %s4119_s21, [#allocation8], %s3997_s4, %s3997_s4, %s3998_s30  }
  0x2e   :  { %s3999_s27 = smov [#allocation10]   ;;  %s4000_s29 = smov [#allocation13]  }
  0x2f   :  { %s100_s28 = sshll.u32 %s3999_s27, 4  ;;  %s121_s0 = sshll.u32 %s4000_s29, 4  ;;  %s101_s28 = int_to_ptr.vmem [resolvable:$true] %s100_s28  ;;  %s4153_s0 = int_to_ptr.vmem [resolvable:$true] %s121_s0 }
  0x30   :  { %s3693_s22 = scalar_lea.hbm %s4588_s8, 16 }
  0x31   :  { %p3694_p2 = scmp.ne.s32.totalorder %s4588_s8, %s3693_s22  ;;  %p3697_p3 = scmp.lt.u32.totalorder %s3693_s22, %s4588_s8 }
  0x33   :  { %p3699_p4 = pnand %p3697_p3, %p3694_p2 }
  0x35   :  { %3702 = shalt.err (!%p3699_p4)
}
  0x36   :  { %s3703_s6 = scalar_lea.vmem %s101_s28, 16  ;;  %s3707_s21 = scalar_lea.vmem %s101_s28, 32 }
  0x37   :  { %p3704_p5 = scmp.ne.s32.totalorder %s101_s28, %s3703_s6  ;;  %p3708_p6 = scmp.lt.s32.totalorder %s101_s28, %s101_s28 }
  0x38   :  { %p3709_p7 = scmp.lt.s32.totalorder %s3707_s21, %s3703_s6 }
  0x3a   :  { %p3710_p8 = por %p3709_p7, %p3708_p6 }
  0x3c   :  { %p3711_p9 = pnand %p3710_p8, %p3704_p5 }
  0x3e   :  { %3714 = shalt.err (!%p3711_p9)
}
  0x3f   :  { %103 = dma.hbm_to_vmem [thread:$0]  %s4588_s8, 16, %s101_s28, [#allocation11]  }
  0x40   :  { %s3715_s20 = scalar_lea.hbm %s4591_s11, 512 }
  0x41   :  { %p3716_p10 = scmp.ne.s32.totalorder %s4591_s11, %s3715_s20  ;;  %p3719_p11 = scmp.lt.u32.totalorder %s3715_s20, %s4591_s11 }
  0x43   :  { %p3721_p12 = pnand %p3719_p11, %p3716_p10 }
  0x45   :  { %3724 = shalt.err (!%p3721_p12)
}
  0x46   :  { %s3725_s24 = scalar_lea.vmem %s4153_s0, 512  ;;  %p3730_p0 = scmp.lt.s32.totalorder %s4153_s0, %s4153_s0 }
  0x47   :  { %p3726_p13 = scmp.ne.s32.totalorder %s4153_s0, %s3725_s24  ;;  %p3731_p1 = scmp.lt.s32.totalorder %s3725_s24, %s3725_s24 }
  0x49   :  { %p3732_p2 = por %p3731_p1, %p3730_p0 }
  0x4b   :  { %p3733_p3 = pnand %p3732_p2, %p3726_p13 }
  0x4d   :  { %3736 = shalt.err (!%p3733_p3)
}
  0x4e   :  { %127 = dma.hbm_to_vmem [thread:$0]  %s4591_s11, 512, %s4153_s0, [#allocation14], %s3997_s4, %s3997_s4, %s3998_s30  }
  0x4f   :  { %s4001_s25 = smov [#allocation16]   ;;  %s4002_s21 = smov [#allocation19]  }
  0x50   :  { %s144_s6 = sshll.u32 %s4001_s25, 4  ;;  %s166_s3 = sshll.u32 %s4002_s21, 4  ;;  %s145_s6 = int_to_ptr.vmem [resolvable:$true] %s144_s6  ;;  %s167_s3 = int_to_ptr.vmem [resolvable:$true] %s166_s3 }
  0x51   :  { %s3737_s29 = scalar_lea.hbm %s4593_s13, 16 }
  0x52   :  { %p3738_p4 = scmp.ne.s32.totalorder %s4593_s13, %s3737_s29  ;;  %p3741_p5 = scmp.lt.u32.totalorder %s3737_s29, %s4593_s13 }
  0x54   :  { %p3743_p6 = pnand %p3741_p5, %p3738_p4 }
  0x56   :  { %3746 = shalt.err (!%p3743_p6)
}
  0x57   :  { %s3747_s11 = scalar_lea.vmem %s145_s6, 16  ;;  %s3751_s4 = scalar_lea.vmem %s145_s6, 32 }
  0x58   :  { %p3748_p7 = scmp.ne.s32.totalorder %s145_s6, %s3747_s11  ;;  %p3752_p8 = scmp.lt.s32.totalorder %s145_s6, %s145_s6 }
  0x59   :  { %p3753_p9 = scmp.lt.s32.totalorder %s3751_s4, %s3747_s11 }
  0x5b   :  { %p3754_p10 = por %p3753_p9, %p3752_p8 }
  0x5d   :  { %p3755_p11 = pnand %p3754_p10, %p3748_p7 }
  0x5f   :  { %3758 = shalt.err (!%p3755_p11)
}
  0x60   :  { %147 = dma.hbm_to_vmem [thread:$0]  %s4593_s13, 16, %s145_s6, [#allocation17]  }
  0x61   :  { %s3759_s8 = scalar_lea.hbm %s4595_s15, 16 }
  0x62   :  { %p3760_p12 = scmp.ne.s32.totalorder %s4595_s15, %s3759_s8  ;;  %p3763_p13 = scmp.lt.u32.totalorder %s3759_s8, %s4595_s15 }
  0x64   :  { %p3765_p0 = pnand %p3763_p13, %p3760_p12 }
  0x66   :  { %3768 = shalt.err (!%p3765_p0)
}
  0x67   :  { %s3769_s27 = scalar_lea.vmem %s167_s3, 16  ;;  %s3773_s29 = scalar_lea.vmem %s167_s3, 32 }
  0x68   :  { %p3770_p1 = scmp.ne.s32.totalorder %s167_s3, %s3769_s27  ;;  %p3774_p2 = scmp.lt.s32.totalorder %s167_s3, %s167_s3 }
  0x69   :  { %p3775_p3 = scmp.lt.s32.totalorder %s3773_s29, %s3769_s27 }
  0x6b   :  { %p3776_p4 = por %p3775_p3, %p3774_p2 }
  0x6d   :  { %p3777_p5 = pnand %p3776_p4, %p3770_p1 }
  0x6f   :  { %3780 = shalt.err (!%p3777_p5)
}
  0x70   :  { %169 = dma.hbm_to_vmem [thread:$0]  %s4595_s15, 16, %s167_s3, [#allocation20]  }
  0x71   :  { %s4003_s20 = smov [#allocation22]   ;;  %s4004_s22 = smov [#allocation2]  }
  0x72   :  { %s187_s1 = sshll.u32 %s4003_s20, 4  ;;  %s41_s2 = sshll.u32 %s4004_s22, 4  ;;  %s188_s1 = int_to_ptr.vmem [resolvable:$true] %s187_s1  ;;  %s4211_s2 = int_to_ptr.vmem [resolvable:$true] %s41_s2 }
  0x73   :  { %s3781_s30 = scalar_lea.hbm %s4597_s17, 256 }
  0x74   :  { %p3782_p6 = scmp.ne.s32.totalorder %s4597_s17, %s3781_s30  ;;  %p3785_p7 = scmp.lt.u32.totalorder %s3781_s30, %s4597_s17 }
  0x76   :  { %p3787_p8 = pnand %p3785_p7, %p3782_p6 }
  0x78   :  { %3790 = shalt.err (!%p3787_p8)
}
  0x79   :  { %s3791_s15 = scalar_lea.vmem %s188_s1, 256  ;;  %p3796_p10 = scmp.lt.s32.totalorder %s188_s1, %s188_s1 }
  0x7a   :  { %p3792_p9 = scmp.ne.s32.totalorder %s188_s1, %s3791_s15  ;;  %p3797_p11 = scmp.lt.s32.totalorder %s3791_s15, %s3791_s15 }
  0x7c   :  { %p3798_p12 = por %p3797_p11, %p3796_p10 }
  0x7e   :  { %p3799_p13 = pnand %p3798_p12, %p3792_p9 }
  0x80   :  { %3802 = shalt.err (!%p3799_p13)
}
  0x81   :  { %s4005_s3 = smov 64   ;;  %s4006_s28 = smov 4  }
  0x82   :  { %193 = dma.hbm_to_vmem [thread:$0]  %s4597_s17, 256, %s188_s1, [#allocation23], %s4005_s3, %s4005_s3, %s4006_s28  }
  0x83   :  { %s4607_s29 = sld [smem:[#allocation35_spill]] }
  0x89   :  { %s3803_s13 = scalar_lea.hbm %s4607_s29, 8192 }
  0x8a   :  { %p3804_p0 = scmp.ne.s32.totalorder %s4607_s29, %s3803_s13  ;;  %p3807_p1 = scmp.lt.u32.totalorder %s3803_s13, %s4607_s29 }
  0x8c   :  { %p3809_p2 = pnand %p3807_p1, %p3804_p0 }
  0x8e   :  { %3812 = shalt.err (!%p3809_p2)
}
  0x8f   :  { %s3813_s4 = scalar_lea.vmem %s4211_s2, 8192  ;;  %p3818_p4 = scmp.lt.s32.totalorder %s4211_s2, %s4211_s2 }
  0x90   :  { %p3814_p3 = scmp.ne.s32.totalorder %s4211_s2, %s3813_s4  ;;  %p3819_p5 = scmp.lt.s32.totalorder %s3813_s4, %s3813_s4 }
  0x92   :  { %p3820_p6 = por %p3819_p5, %p3818_p4 }
  0x94   :  { %p3821_p7 = pnand %p3820_p6, %p3814_p3 }
  0x96   :  { %3824 = shalt.err (!%p3821_p7)
}
  0x97   :  { %s4007_s17 = smov 256   ;;  %s4008_s1 = smov 16  }
  0x98   :  { %47 = dma.hbm_to_vmem [thread:$0]  %s4607_s29, 8192, %s4211_s2, [#allocation3], %s4007_s17, %s4007_s17, %s4008_s1  }
  0x99   :  { %s4009_s23 = smov [#allocation6]   ;;  %s4010_s8 = smov [#allocation9]  }
  0x9a   :  { %s66_s24 = sshll.u32 %s4009_s23, 4  ;;  %s87_s15 = sshll.u32 %s4010_s8, 4  ;;  %s67_s24 = int_to_ptr.vmem [resolvable:$true] %s66_s24  ;;  %s4248_s15 = int_to_ptr.vmem [resolvable:$true] %s87_s15 }
  0x9b   :  { %s3825_s26 = scalar_lea.hbm %s4585_s5, 64 }
  0x9c   :  { %p3826_p8 = scmp.ne.s32.totalorder %s4585_s5, %s3825_s26  ;;  %p3829_p9 = scmp.lt.u32.totalorder %s3825_s26, %s4585_s5 }
  0x9e   :  { %p3831_p10 = pnand %p3829_p9, %p3826_p8 }
  0xa0   :  { %3834 = shalt.err (!%p3831_p10)
}
  0xa1   :  { %s3835_s2 = scalar_lea.vmem %s67_s24, 64  ;;  %p3840_p12 = scmp.lt.s32.totalorder %s67_s24, %s67_s24 }
  0xa2   :  { %p3836_p11 = scmp.ne.s32.totalorder %s67_s24, %s3835_s2  ;;  %p3841_p13 = scmp.lt.s32.totalorder %s3835_s2, %s3835_s2 }
  0xa4   :  { %p3842_p0 = por %p3841_p13, %p3840_p12 }
  0xa6   :  { %p3843_p1 = pnand %p3842_p0, %p3836_p11 }
  0xa8   :  { %3846 = shalt.err (!%p3843_p1)
}
  0xa9   :  { %69 = dma.hbm_to_vmem [thread:$0]  %s4585_s5, 64, %s67_s24, [#allocation5]  }
  0xaa   :  { %s3847_s30 = scalar_lea.hbm %s4587_s7, 512 }
  0xab   :  { %p3848_p2 = scmp.ne.s32.totalorder %s4587_s7, %s3847_s30  ;;  %p3851_p3 = scmp.lt.u32.totalorder %s3847_s30, %s4587_s7 }
  0xad   :  { %p3853_p4 = pnand %p3851_p3, %p3848_p2 }
  0xaf   :  { %3856 = shalt.err (!%p3853_p4)
}
  0xb0   :  { %s3857_s21 = scalar_lea.vmem %s4248_s15, 512  ;;  %p3862_p6 = scmp.lt.s32.totalorder %s4248_s15, %s4248_s15 }
  0xb1   :  { %p3858_p5 = scmp.ne.s32.totalorder %s4248_s15, %s3857_s21  ;;  %p3863_p7 = scmp.lt.s32.totalorder %s3857_s21, %s3857_s21 }
  0xb3   :  { %p3864_p8 = por %p3863_p7, %p3862_p6 }
  0xb5   :  { %p3865_p9 = pnand %p3864_p8, %p3858_p5 }
  0xb7   :  { %3868 = shalt.err (!%p3865_p9)
}
  0xb8   :  { %93 = dma.hbm_to_vmem [thread:$0]  %s4587_s7, 512, %s4248_s15, [#allocation8], %s4007_s17, %s4007_s17, %s4008_s1  }
  0xb9   :  { %s4011_s26 = smov [#allocation12]   ;;  %s4012_s13 = smov [#allocation15]  }
  0xba   :  { %s110_s27 = sshll.u32 %s4011_s26, 4  ;;  %s134_s6 = sshll.u32 %s4012_s13, 4  ;;  %s111_s27 = int_to_ptr.vmem [resolvable:$true] %s110_s27  ;;  %s135_s6 = int_to_ptr.vmem [resolvable:$true] %s134_s6 }
  0xbb   :  { %s3869_s29 = scalar_lea.hbm %s4589_s9, 32 }
  0xbc   :  { %p3870_p10 = scmp.ne.s32.totalorder %s4589_s9, %s3869_s29  ;;  %p3873_p11 = scmp.lt.u32.totalorder %s3869_s29, %s4589_s9 }
  0xbe   :  { %p3875_p12 = pnand %p3873_p11, %p3870_p10 }
  0xc0   :  { %3878 = shalt.err (!%p3875_p12)
}
  0xc1   :  { %s3879_s7 = scalar_lea.vmem %s111_s27, 32  ;;  %p3884_p0 = scmp.lt.s32.totalorder %s111_s27, %s111_s27 }
  0xc2   :  { %p3880_p13 = scmp.ne.s32.totalorder %s111_s27, %s3879_s7  ;;  %p3885_p1 = scmp.lt.s32.totalorder %s3879_s7, %s3879_s7 }
  0xc4   :  { %p3886_p2 = por %p3885_p1, %p3884_p0 }
  0xc6   :  { %p3887_p3 = pnand %p3886_p2, %p3880_p13 }
  0xc8   :  { %3890 = shalt.err (!%p3887_p3)
}
  0xc9   :  { %113 = dma.hbm_to_vmem [thread:$0]  %s4589_s9, 32, %s111_s27, [#allocation11]  }
  0xca   :  { %s3891_s23 = scalar_lea.hbm %s4592_s12, 16 }
  0xcb   :  { %p3892_p4 = scmp.ne.s32.totalorder %s4592_s12, %s3891_s23  ;;  %p3895_p5 = scmp.lt.u32.totalorder %s3891_s23, %s4592_s12 }
  0xcd   :  { %p3897_p6 = pnand %p3895_p5, %p3892_p4 }
  0xcf   :  { %3900 = shalt.err (!%p3897_p6)
}
  0xd0   :  { %s3901_s24 = scalar_lea.vmem %s135_s6, 16  ;;  %s3905_s26 = scalar_lea.vmem %s135_s6, 32 }
  0xd1   :  { %p3902_p7 = scmp.ne.s32.totalorder %s135_s6, %s3901_s24  ;;  %p3906_p8 = scmp.lt.s32.totalorder %s135_s6, %s135_s6 }
  0xd2   :  { %p3907_p9 = scmp.lt.s32.totalorder %s3905_s26, %s3901_s24 }
  0xd4   :  { %p3908_p10 = por %p3907_p9, %p3906_p8 }
  0xd6   :  { %p3909_p11 = pnand %p3908_p10, %p3902_p7 }
  0xd8   :  { %3912 = shalt.err (!%p3909_p11)
}
  0xd9   :  { %137 = dma.hbm_to_vmem [thread:$0]  %s4592_s12, 16, %s135_s6, [#allocation14]  }
  0xda   :  { %s4013_s13 = smov [#allocation18]   ;;  %s4014_s2 = smov [#allocation21]  }
  0xdb   :  { %s153_s20 = sshll.u32 %s4013_s13, 4  ;;  %s175_s29 = sshll.u32 %s4014_s2, 4  ;;  %s154_s20 = int_to_ptr.vmem [resolvable:$true] %s153_s20  ;;  %s4306_s29 = int_to_ptr.vmem [resolvable:$true] %s175_s29 }
  0xdc   :  { %s3913_s4 = scalar_lea.hbm %s4594_s14, 192 }
  0xdd   :  { %p3914_p12 = scmp.ne.s32.totalorder %s4594_s14, %s3913_s4  ;;  %p3917_p13 = scmp.lt.u32.totalorder %s3913_s4, %s4594_s14 }
  0xdf   :  { %p3919_p0 = pnand %p3917_p13, %p3914_p12 }
  0xe1   :  { %3922 = shalt.err (!%p3919_p0)
}
  0xe2   :  { %s3923_s12 = scalar_lea.vmem %s154_s20, 192  ;;  %p3928_p2 = scmp.lt.s32.totalorder %s154_s20, %s154_s20 }
  0xe3   :  { %p3924_p1 = scmp.ne.s32.totalorder %s154_s20, %s3923_s12  ;;  %p3929_p3 = scmp.lt.s32.totalorder %s3923_s12, %s3923_s12 }
  0xe5   :  { %p3930_p4 = por %p3929_p3, %p3928_p2 }
  0xe7   :  { %p3931_p5 = pnand %p3930_p4, %p3924_p1 }
  0xe9   :  { %3934 = shalt.err (!%p3931_p5)
}
  0xea   :  { %159 = dma.hbm_to_vmem [thread:$0]  %s4594_s14, 192, %s154_s20, [#allocation17], %s4005_s3, %s4005_s3, %s4006_s28  }
  0xeb   :  { %s3935_s8 = scalar_lea.hbm %s4596_s16, 1024 }
  0xec   :  { %p3936_p6 = scmp.ne.s32.totalorder %s4596_s16, %s3935_s8  ;;  %p3939_p7 = scmp.lt.u32.totalorder %s3935_s8, %s4596_s16 }
  0xee   :  { %p3941_p8 = pnand %p3939_p7, %p3936_p6 }
  0xf0   :  { %3944 = shalt.err (!%p3941_p8)
}
  0xf1   :  { %s3945_s26 = scalar_lea.vmem %s4306_s29, 1024  ;;  %p3950_p10 = scmp.lt.s32.totalorder %s4306_s29, %s4306_s29 }
  0xf2   :  { %p3946_p9 = scmp.ne.s32.totalorder %s4306_s29, %s3945_s26  ;;  %p3951_p11 = scmp.lt.s32.totalorder %s3945_s26, %s3945_s26 }
  0xf4   :  { %p3952_p12 = por %p3951_p11, %p3950_p10 }
  0xf6   :  { %p3953_p13 = pnand %p3952_p12, %p3946_p9 }
  0xf8   :  { %3956 = shalt.err (!%p3953_p13)
}
  0xf9   :  { %181 = dma.hbm_to_vmem [thread:$0]  %s4596_s16, 1024, %s4306_s29, [#allocation20], %s4005_s3, %s4005_s3, %s4006_s28  }
  0xfa   :  { %s4015_s27 = smov [#allocation24]   ;;  %s3957_s22 = scalar_lea.hbm %s4598_s18, 16 }
  0xfb   :  { %s200_s13 = sshll.u32 %s4015_s27, 4  ;;  %p3958_p0 = scmp.ne.s32.totalorder %s4598_s18, %s3957_s22  ;;  %s201_s13 = int_to_ptr.vmem [resolvable:$true] %s200_s13 }
  0xfc   :  { %p3961_p1 = scmp.lt.u32.totalorder %s3957_s22, %s4598_s18 }
  0xfe   :  { %p3963_p2 = pnand %p3961_p1, %p3958_p0 }
 0x100   :  { %3966 = shalt.err (!%p3963_p2)
}
 0x101   :  { %s3967_s17 = scalar_lea.vmem %s201_s13, 16  ;;  %s3971_s16 = scalar_lea.vmem %s201_s13, 32 }
 0x102   :  { %p3968_p3 = scmp.ne.s32.totalorder %s201_s13, %s3967_s17  ;;  %p3972_p4 = scmp.lt.s32.totalorder %s201_s13, %s201_s13 }
 0x103   :  { %p3973_p5 = scmp.lt.s32.totalorder %s3971_s16, %s3967_s17 }
 0x105   :  { %p3974_p6 = por %p3973_p5, %p3972_p4 }
 0x107   :  { %p3975_p7 = pnand %p3974_p6, %p3968_p3 }
 0x109   :  { %3978 = shalt.err (!%p3975_p7)
}
 0x10a   :  { %203 = dma.hbm_to_vmem [thread:$0]  %s4598_s18, 16, %s201_s13, [#allocation23]  }
 0x10b   :  { %3979 = dma.done.wait [#allocation3], 8192  }
 0x10c   :  { %3980 = vsyncadd [#allocation3], 4294959104 }
 0x10d   :  { %3981 = dma.done.wait [#allocation5], 80  }
 0x10e   :  { %3982 = vsyncadd [#allocation5], 4294967216 }
 0x10f   :  { %3983 = dma.done.wait [#allocation8], 8704  }
 0x110   :  { %3984 = vsyncadd [#allocation8], 4294958592 }
 0x111   :  { %3985 = dma.done.wait [#allocation11], 48  }
 0x112   :  { %3986 = vsyncadd [#allocation11], 4294967248 }
 0x113   :  { %3987 = dma.done.wait [#allocation14], 528  }
 0x114   :  { %3988 = vsyncadd [#allocation14], 4294966768 }
 0x115   :  { %3989 = dma.done.wait [#allocation17], 208  }
 0x116   :  { %3990 = vsyncadd [#allocation17], 4294967088 }
 0x117   :  { %3991 = dma.done.wait [#allocation20], 1040  }
 0x118   :  { %3992 = vsyncadd [#allocation20], 4294966256 }
 0x119   :  { %3993 = dma.done.wait [#allocation23], 272  }
 0x11a   :  { %3994 = vsyncadd [#allocation23], 4294967024  ;;  %v3423_v0 = vld [vmem:[#allocation2 + $0x4] ss:$16 sps:$4 sm:$0xff]   ;;  %v3425_v1 = vld [vmem:[#allocation2] ss:$16 sps:$4 sm:$0xff]  }
 0x11b   :  { %647 = vmatprep.subr.bf16.mxu0 %v3423_v0  ;;  %v3426_v2 = vld [vmem:[#allocation2 + $0xc] ss:$16 sps:$4 sm:$0xff]   ;;  %v3428_v3 = vld [vmem:[#allocation2 + $0x8] ss:$16 sps:$4 sm:$0xff]   ;;  %v3429_v4 = vld [vmem:[#allocation2 + $0x24] ss:$16 sps:$4 sm:$0xff]  }
 0x11c   :  { %648 = vmatpush1.bf16.msra.mxu0 %v3425_v1  ;;  %v3431_v5 = vld [vmem:[#allocation2 + $0x20] ss:$16 sps:$4 sm:$0xff]   ;;  %688 = vmatprep.subr.bf16.mxu1 %v3426_v2  ;;  %v3432_v6 = vld [vmem:[#allocation2 + $0x2c] ss:$16 sps:$4 sm:$0xff]   ;;  %v3434_v7 = vld [vmem:[#allocation2 + $0x28] ss:$16 sps:$4 sm:$0xff]  }
 0x11d   :  { %689 = vmatpush1.bf16.msra.mxu1 %v3428_v3  ;;  %649 = vmatprep.subr.bf16.mxu0 %v3429_v4  ;;  %v3435_v8 = vld [vmem:[#allocation2 + $0x44] ss:$16 sps:$4 sm:$0xff]   ;;  %v3437_v9 = vld [vmem:[#allocation2 + $0x40] ss:$16 sps:$4 sm:$0xff]   ;;  %v3438_v10 = vld [vmem:[#allocation2 + $0x4c] ss:$16 sps:$4 sm:$0xff]  }
 0x11e   :  { %690 = vmatprep.subr.bf16.mxu1 %v3432_v6  ;;  %v3441_v11 = vld [vmem:[#allocation2 + $0x64] ss:$16 sps:$4 sm:$0xff]   ;;  %v3440_v12 = vld [vmem:[#allocation2 + $0x48] ss:$16 sps:$4 sm:$0xff]   ;;  %v3444_v13 = vld [vmem:[#allocation2 + $0x6c] ss:$16 sps:$4 sm:$0xff]  }
 0x11f   :  { %v3443_v14 = vld [vmem:[#allocation2 + $0x60] ss:$16 sps:$4 sm:$0xff]   ;;  %v3447_v15 = vld [vmem:[#allocation2 + $0x84] ss:$16 sps:$4 sm:$0xff]   ;;  %v3446_v16 = vld [vmem:[#allocation2 + $0x68] ss:$16 sps:$4 sm:$0xff]  }
 0x120   :  { %650 = vmatpush1.bf16.msra.mxu0 %v3431_v5  ;;  %v3450_v17 = vld [vmem:[#allocation2 + $0x8c] ss:$16 sps:$4 sm:$0xff]   ;;  %v3449_v18 = vld [vmem:[#allocation2 + $0x80] ss:$16 sps:$4 sm:$0xff]   ;;  %v3453_v19 = vld [vmem:[#allocation2 + $0xa4] ss:$16 sps:$4 sm:$0xff]  }
 0x121   :  { %651 = vmatprep.subr.bf16.mxu0 %v3435_v8  ;;  %691 = vmatpush1.bf16.msra.mxu1 %v3434_v7  ;;  %v3452_v20 = vld [vmem:[#allocation2 + $0x88] ss:$16 sps:$4 sm:$0xff]   ;;  %v3456_v21 = vld [vmem:[#allocation2 + $0xac] ss:$16 sps:$4 sm:$0xff]   ;;  %v3455_v22 = vld [vmem:[#allocation2 + $0xa0] ss:$16 sps:$4 sm:$0xff]   ;;  %v250_v8 = vlaneseq }
 0x122   :  { %692 = vmatprep.subr.bf16.mxu1 %v3438_v10  ;;  %v3459_v23 = vld [vmem:[#allocation2 + $0xc4] ss:$16 sps:$4 sm:$0xff]   ;;  %v3458_v24 = vld [vmem:[#allocation2 + $0xa8] ss:$16 sps:$4 sm:$0xff]   ;;  %v3462_v25 = vld [vmem:[#allocation2 + $0xcc] ss:$16 sps:$4 sm:$0xff]  }
 0x123   :  { %v3461_v26 = vld [vmem:[#allocation2 + $0xc0] ss:$16 sps:$4 sm:$0xff]   ;;  %v3465_v27 = vld [vmem:[#allocation2 + $0xe4] ss:$16 sps:$4 sm:$0xff]   ;;  %v3464_v28 = vld [vmem:[#allocation2 + $0xc8] ss:$16 sps:$4 sm:$0xff]  }
 0x124   :  { %652 = vmatpush1.bf16.msra.mxu0 %v3437_v9  ;;  %v3468_v29 = vld [vmem:[#allocation2 + $0xec] ss:$16 sps:$4 sm:$0xff]   ;;  %v3467_v30 = vld [vmem:[#allocation2 + $0xe0] ss:$16 sps:$4 sm:$0xff]   ;;  %v3471_v31 = vld [vmem:[#allocation2 + $0x104] ss:$16 sps:$4 sm:$0xff]  }
 0x125   :  { %653 = vmatprep.subr.bf16.mxu0 %v3441_v11  ;;  %693 = vmatpush1.bf16.msra.mxu1 %v3440_v12  ;;  %v3470_v32 = vld [vmem:[#allocation2 + $0xe8] ss:$16 sps:$4 sm:$0xff]   ;;  %v3474_v33 = vld [vmem:[#allocation2 + $0x10c] ss:$16 sps:$4 sm:$0xff]   ;;  %v3473_v34 = vld [vmem:[#allocation2 + $0x100] ss:$16 sps:$4 sm:$0xff]  }
 0x126   :  { %694 = vmatprep.subr.bf16.mxu1 %v3444_v13  ;;  %v3477_v35 = vld [vmem:[#allocation2 + $0x124] ss:$16 sps:$4 sm:$0xff]   ;;  %v3476_v36 = vld [vmem:[#allocation2 + $0x108] ss:$16 sps:$4 sm:$0xff]   ;;  %v3480_v37 = vld [vmem:[#allocation2 + $0x12c] ss:$16 sps:$4 sm:$0xff]  }
 0x127   :  { %v3479_v38 = vld [vmem:[#allocation2 + $0x120] ss:$16 sps:$4 sm:$0xff]   ;;  %v3483_v39 = vld [vmem:[#allocation2 + $0x144] ss:$16 sps:$4 sm:$0xff]   ;;  %v3482_v40 = vld [vmem:[#allocation2 + $0x128] ss:$16 sps:$4 sm:$0xff]  }
 0x128   :  { %654 = vmatpush1.bf16.msra.mxu0 %v3443_v14  ;;  %v3486_v41 = vld [vmem:[#allocation2 + $0x14c] ss:$16 sps:$4 sm:$0xff]   ;;  %v3485_v42 = vld [vmem:[#allocation2 + $0x140] ss:$16 sps:$4 sm:$0xff]   ;;  %v3489_v43 = vld [vmem:[#allocation2 + $0x164] ss:$16 sps:$4 sm:$0xff]  }
 0x129   :  { %655 = vmatprep.subr.bf16.mxu0 %v3447_v15  ;;  %695 = vmatpush1.bf16.msra.mxu1 %v3446_v16  ;;  %v3488_v44 = vld [vmem:[#allocation2 + $0x148] ss:$16 sps:$4 sm:$0xff]   ;;  %v3491_v45 = vld [vmem:[#allocation2 + $0x160] ss:$16 sps:$4 sm:$0xff]   ;;  %v3492_v46 = vld [vmem:[#allocation2 + $0x16c] ss:$16 sps:$4 sm:$0xff]  }
 0x12a   :  { %696 = vmatprep.subr.bf16.mxu1 %v3450_v17  ;;  %s4608_s1 = sld [smem:[#allocation33_spill]]  ;;  %v3494_v48 = vld [vmem:[#allocation2 + $0x168] ss:$16 sps:$4 sm:$0xff]   ;;  %v3495_v49 = vld [vmem:[#allocation2 + $0x184] ss:$16 sps:$4 sm:$0xff]   ;;  %v4016_v4 = vmov 0.0  }
 0x12b   :  { %v3498_v51 = vld [vmem:[#allocation2 + $0x18c] ss:$16 sps:$4 sm:$0xff]   ;;  %v3497_v52 = vld [vmem:[#allocation2 + $0x180] ss:$16 sps:$4 sm:$0xff]   ;;  %v3501_v53 = vld [vmem:[#allocation2 + $0x1a4] ss:$16 sps:$4 sm:$0xff]  }
 0x12c   :  { %656 = vmatpush1.bf16.msra.mxu0 %v3449_v18  ;;  %v3500_v54 = vld [vmem:[#allocation2 + $0x188] ss:$16 sps:$4 sm:$0xff]   ;;  %v3504_v55 = vld [vmem:[#allocation2 + $0x1ac] ss:$16 sps:$4 sm:$0xff]   ;;  %v3503_v56 = vld [vmem:[#allocation2 + $0x1a0] ss:$16 sps:$4 sm:$0xff]  }
 0x12d   :  { %657 = vmatprep.subr.bf16.mxu0 %v3453_v19  ;;  %697 = vmatpush1.bf16.msra.mxu1 %v3452_v20  ;;  %v3507_v57 = vld [vmem:[#allocation2 + $0x1c4] ss:$16 sps:$4 sm:$0xff]   ;;  %v3506_v58 = vld [vmem:[#allocation2 + $0x1a8] ss:$16 sps:$4 sm:$0xff]   ;;  %v3510_v59 = vld [vmem:[#allocation2 + $0x1cc] ss:$16 sps:$4 sm:$0xff]  }
 0x12e   :  { %698 = vmatprep.subr.bf16.mxu1 %v3456_v21  ;;  %v3509_v60 = vld [vmem:[#allocation2 + $0x1c0] ss:$16 sps:$4 sm:$0xff]   ;;  %v3513_v61 = vld [vmem:[#allocation2 + $0x1e4] ss:$16 sps:$4 sm:$0xff]   ;;  %v3512_v62 = vld [vmem:[#allocation2 + $0x1c8] ss:$16 sps:$4 sm:$0xff]  }
 0x12f   :  { %v3516_v63 = vld [vmem:[#allocation2 + $0x1ec] ss:$16 sps:$4 sm:$0xff]   ;;  %v3515_v0 = vld [vmem:[#allocation2 + $0x1e0] ss:$16 sps:$4 sm:$0xff]   ;;  %v3518_v2 = vld [vmem:[#allocation2 + $0x1e8] ss:$16 sps:$4 sm:$0xff]  }
 0x130   :  { %658 = vmatpush1.bf16.msra.mxu0 %v3455_v22  ;;  %v256_v47 = vld [vmem:[%s4608_s1 + $0x8] sm:$0xff]  ;;  %v255_v1 = vld [vmem:[%s4608_s1] sm:$0xff]  ;;  %s4609_s23 = sld [smem:[#allocation36_spill]]  ;;  %v4379_v9 = vshrl.u32 %v250_v8, 7  ;;  %vm898_vm1 = vcmask 64512   ;;  %vm2003_vm6 = vcmask 130048  }
 0x131   :  { %659 = vmatprep.subr.bf16.mxu0 %v3459_v23  ;;  %699 = vmatpush1.bf16.msra.mxu1 %v3458_v24  ;;  %v262_v50 = vpack.c.bf16 %v256_v47, %v256_v47  ;;  %v261_v3 = vpack.c.bf16 %v255_v1, %v255_v1  ;;  %vm4018_vm9 = vmmov 0   ;;  %vm2535_vm10 = vcmask 261120   ;;  %s4610_s20 = sld [smem:[#allocation34_spill]] }
 0x132   :  { %700 = vmatprep.subr.bf16.mxu1 %v3462_v25  ;;  %vm252_vm0 = vcmp.lt.s32.totalorder %v4379_v9, 2  ;;  %vm2811_vm11 = vcmask 1043456   ;;  %vm2807_vm12 = vcmask 195584  }
 0x133   :  { %679 = vmatprep.mubr.bf16.mxu0 %v262_v50  ;;  %720 = vmatprep.mubr.bf16.mxu1 %v262_v50  ;;  %v4383_v10 = vsel %vm252_vm0, 1.0, %v4016_v4 }
 0x134   :  { %660 = vmatpush1.bf16.msra.mxu0 %v3461_v26 }
 0x135   :  { %661 = vmatprep.subr.bf16.mxu0 %v3465_v27  ;;  %701 = vmatpush1.bf16.msra.mxu1 %v3464_v28 }
 0x136   :  { %702 = vmatprep.subr.bf16.mxu1 %v3468_v29  ;;  %v4365_v5 = vld [vmem:[%s4609_s23 + $0x8] sm:$0xff]  ;;  %v4370_v6 = vld [vmem:[%s4609_s23] sm:$0xff]  ;;  %v260_v7 = vld [vmem:[%s4609_s23 + $0x18] sm:$0xff] }
 0x138   :  { %662 = vmatpush1.bf16.msra.mxu0 %v3467_v30 }
 0x139   :  { %663 = vmatprep.subr.bf16.mxu0 %v3471_v31  ;;  %703 = vmatpush1.bf16.msra.mxu1 %v3470_v32 }
 0x13a   :  { %704 = vmatprep.subr.bf16.mxu1 %v3474_v33 }
 0x13c   :  { %664 = vmatpush1.bf16.msra.mxu0 %v3473_v34 }
 0x13d   :  { %665 = vmatprep.subr.bf16.mxu0 %v3477_v35  ;;  %705 = vmatpush1.bf16.msra.mxu1 %v3476_v36 }
 0x13e   :  { %706 = vmatprep.subr.bf16.mxu1 %v3480_v37 }
 0x140   :  { %666 = vmatpush1.bf16.msra.mxu0 %v3479_v38 }
 0x141   :  { %667 = vmatprep.subr.bf16.mxu0 %v3483_v39  ;;  %707 = vmatpush1.bf16.msra.mxu1 %v3482_v40 }
 0x142   :  { %708 = vmatprep.subr.bf16.mxu1 %v3486_v41 }
 0x144   :  { %668 = vmatpush1.bf16.msra.mxu0 %v3485_v42 }
 0x145   :  { %669 = vmatprep.subr.bf16.mxu0 %v3489_v43  ;;  %709 = vmatpush1.bf16.msra.mxu1 %v3488_v44  ;;  %v4398_v44 = vld [vmem:[%s4609_s23 + $0x10] sm:$0xff] }
 0x146   :  { %710 = vmatprep.subr.bf16.mxu1 %v3492_v46 }
 0x148   :  { %670 = vmatpush1.bf16.msra.mxu0 %v3491_v45 }
 0x149   :  { %671 = vmatprep.subr.bf16.mxu0 %v3495_v49  ;;  %711 = vmatpush1.bf16.msra.mxu1 %v3494_v48 }
 0x14a   :  { %712 = vmatprep.subr.bf16.mxu1 %v3498_v51  ;;  %v4411_v51 = vsub.s32 0, %v4379_v9 }
 0x14c   :  { %672 = vmatpush1.bf16.msra.mxu0 %v3497_v52 }
 0x14d   :  { %673 = vmatprep.subr.bf16.mxu0 %v3501_v53  ;;  %713 = vmatpush1.bf16.msra.mxu1 %v3500_v54 }
 0x14e   :  { %714 = vmatprep.subr.bf16.mxu1 %v3504_v55 }
 0x150   :  { %674 = vmatpush1.bf16.msra.mxu0 %v3503_v56 }
 0x151   :  { %675 = vmatprep.subr.bf16.mxu0 %v3507_v57  ;;  %715 = vmatpush1.bf16.msra.mxu1 %v3506_v58 }
 0x152   :  { %716 = vmatprep.subr.bf16.mxu1 %v3510_v59 }
 0x154   :  { %676 = vmatpush1.bf16.msra.mxu0 %v3509_v60 }
 0x155   :  { %677 = vmatprep.subr.bf16.mxu0 %v3513_v61  ;;  %717 = vmatpush1.bf16.msra.mxu1 %v3512_v62 }
 0x156   :  { %718 = vmatprep.subr.bf16.mxu1 %v3516_v63 }
 0x158   :  { %678 = vmatpush1.bf16.msra.mxu0 %v3515_v0 }
 0x159   :  { %719 = vmatpush1.bf16.msra.mxu1 %v3518_v2  ;;  %757 = vmatprep.subr.mxu0 %v4365_v5 }
 0x15a   :  { %902 = vmatprep.subr.mxu1 %v4365_v5 }
 0x15b   :  { %680 = vmatmul.mubr.bf16.vlgmr.msra.gmra.mrb[0].mxu0 %v261_v3 }
 0x15c   :  { %721 = vmatmul.mubr.bf16.vlgmr.msra.gmra.mrb[0].mxu1 %v261_v3 }
 0x15d   :  { %966 = vmatprep.mubr.f32.mxu1 %v4016_v4  ;;  %903 = vmatpush1.msra.mxu1 %v4370_v6 }
 0x15e   :  { %973 = vmatprep.subr.mxu1 %v260_v7 }
 0x161   :  { %758 = vmatpush1.xpose.msra.mxu0 %v4370_v6 }
 0x162   :  { %827 = vmatprep.subr.mxu0 %v260_v7 }
 0x22e   :  { %v681_v11 = vpop.f32.mrb[0].mxu0 }
 0x22f   :  { %v729_v12 = vmul.f32 %v4383_v10, %v681_v11  ;;  %v683_v13 = vpop.f32.mrb[1].mxu0  ;;  %v4387_v15 = vpop.f32.mrb[0].mxu1 }
 0x230   :  { %v730_v14 = vmul.f32 %v4383_v10, %v683_v13  ;;  %v685_v16 = vpop.f32.mrb[2].mxu0  ;;  %v731_v18 = vmul.f32 %v4383_v10, %v4387_v15  ;;  %v4391_v19 = vpop.f32.mrb[1].mxu1 }
 0x231   :  { %v733_v17 = vrot.slane %v729_v12, 4  ;;  %v686_v20 = vpop.f32.mrb[3].mxu0  ;;  %v732_v22 = vmul.f32 %v4383_v10, %v4391_v19  ;;  %v726_v23 = vpop.f32.mrb[2].mxu1 }
 0x232   :  { %v739_v21 = vrot.slane %v730_v14, 4  ;;  %v745_v25 = vrot.slane %v731_v18, 4  ;;  %v727_v26 = vpop.f32.mrb[3].mxu1 }
 0x233   :  { %v734_v24 = vadd.f32 %v733_v17, %v729_v12  ;;  %v751_v28 = vrot.slane %v732_v22, 4 }
 0x234   :  { %v740_v27 = vadd.f32 %v739_v21, %v730_v14  ;;  %v746_v30 = vadd.f32 %v745_v25, %v731_v18 }
 0x235   :  { %v735_v29 = vrot.slane %v734_v24, 2  ;;  %v752_v32 = vadd.f32 %v751_v28, %v732_v22 }
 0x236   :  { %v741_v31 = vrot.slane %v740_v27, 2  ;;  %v747_v37 = vrot.slane %v746_v30, 2 }
 0x237   :  { %v736_v33 = vadd.f32 %v735_v29, %v734_v24  ;;  %v753_v35 = vrot.slane %v752_v32, 2 }
 0x238   :  { %v742_v34 = vadd.f32 %v741_v31, %v740_v27  ;;  %v748_v42 = vadd.f32 %v747_v37, %v746_v30  ;;  %v3524_v37 = vld [vmem:[#allocation7 + $0x14] ss:$8 sps:$4 sm:$0xff]  }
 0x239   :  { %v737_v36 = vrot.slane %v736_v33, 1  ;;  %v754_v38 = vadd.f32 %v753_v35, %v752_v32  ;;  %v3519_v35 = vld [vmem:[#allocation7] ss:$8 sps:$4 sm:$0xff]  }
 0x23a   :  { %v743_v39 = vrot.slane %v742_v34, 1  ;;  %v749_v46 = vrot.slane %v748_v42, 1 }
 0x23b   :  { %v755_v41 = vrot.slane %v754_v38, 1  ;;  %v738_v43 = vadd.f32 %v737_v36, %v736_v33  ;;  %v3521_v36 = vld [vmem:[#allocation7 + $0x4] ss:$8 sps:$4 sm:$0xff]  }
 0x23c   :  { %v744_v40 = vadd.f32 %v743_v39, %v742_v34  ;;  %v750_v47 = vadd.f32 %v749_v46, %v748_v42  ;;  %v3527_v39 = vld [vmem:[#allocation7 + $0x24] ss:$8 sps:$4 sm:$0xff]   ;;  %v3528_v42 = vld [vmem:[#allocation7 + $0x30] ss:$8 sps:$4 sm:$0xff]   ;;  %v3536_v46 = vld [vmem:[#allocation7 + $0x54] ss:$8 sps:$4 sm:$0xff]  }
 0x23d   :  { %v756_v45 = vadd.f32 %v755_v41, %v754_v38  ;;  %v3522_v38 = vld [vmem:[#allocation7 + $0x10] ss:$8 sps:$4 sm:$0xff]   ;;  %v3530_v41 = vld [vmem:[#allocation7 + $0x34] ss:$8 sps:$4 sm:$0xff]  }
 0x23e   :  { %821 = vmatprep.mubr.f32.mxu0 %v744_v40  ;;  %v3525_v40 = vld [vmem:[#allocation7 + $0x20] ss:$8 sps:$4 sm:$0xff]  }
 0x23f   :  { %822 = vmatmul.mubr.f32.vlgmr.msra.gmra.mrb[4].mxu0 %v738_v43  ;;  %v3533_v43 = vld [vmem:[#allocation7 + $0x44] ss:$8 sps:$4 sm:$0xff]  }
 0x240   :  { %828 = vmatpush1.xpose.msra.mxu0 %v4398_v44  ;;  %891 = vmatprep.mubr.f32.mxu0 %v756_v45  ;;  %v3531_v45 = vld [vmem:[#allocation7 + $0x40] ss:$8 sps:$4 sm:$0xff]  }
 0x241   :  { %1096 = vmatprep.subr.mxu0 %v4365_v5 }
 0x247   :  { %892 = vmatmul.mubr.f32.vlgmr.msra.gmra.mrb[4].mxu0 %v750_v47  ;;  %v3534_v47 = vld [vmem:[#allocation7 + $0x50] ss:$8 sps:$4 sm:$0xff]  }
 0x248   :  { %1097 = vmatpush1.xpose.msra.mxu0 %v4370_v6 }
 0x249   :  { %1166 = vmatprep.subr.mxu0 %v260_v7 }
 0x31a   :  { %v893_v48 = vpop.f32.mrb[4].mxu0 }
 0x31b   :  { %v897_v49 = vmul.f32 0.0078125, %v893_v48  ;;  %v895_v50 = vpop.f32.mrb[5].mxu0  ;;  %v3539_v48 = vld [vmem:[#allocation7 + $0x64] ss:$8 sps:$4 sm:$0xff]  }
 0x31c   :  { %v3542_v50 = vld [vmem:[#allocation7 + $0x74] ss:$8 sps:$4 sm:$0xff]  }
 0x31d   :  { %3109 = vmatmul.mubr.msk.f32.vlgmr.msra.gmra.mrb[4].mxu1 %vm898_vm1, %v897_v49 }
 0x31e   :  { %974 = vmatpush1.msra.mxu1 %v4398_v44  ;;  %1037 = vmatprep.mubr.f32.mxu1 %v4016_v4 }
 0x31f   :  { %1244 = vmatprep.subr.mxu1 %v4365_v5 }
 0x321   :  { %3110 = vmatmul.mubr.msk.f32.vlgmr.msra.gmra.mrb[6].mxu1 %vm898_vm1, %v897_v49  ;;  %v3537_v49 = vld [vmem:[#allocation7 + $0x60] ss:$8 sps:$4 sm:$0xff]  }
 0x322   :  { %1245 = vmatpush1.msra.mxu1 %v4370_v6  ;;  %1308 = vmatprep.mubr.f32.mxu1 %v4016_v4 }
 0x323   :  { %1315 = vmatprep.subr.mxu1 %v260_v7 }
 0x3f0   :  { %v968_v52 = vpop.f32.mrb[4].mxu1 }
 0x3f1   :  { %v1047_v53 = vrot.slane %v968_v52, %v4411_v51  ;;  %v970_v54 = vpop.f32.mrb[5].mxu1  ;;  %v3540_v52 = vld [vmem:[#allocation7 + $0x70] ss:$8 sps:$4 sm:$0xff]  }
 0x3f2   :  { %v1051_v55 = vrot.slane %v970_v54, %v4411_v51  ;;  %v3543_v54 = vld [vmem:[#allocation7 + $0x80] ss:$8 sps:$4 sm:$0xff]  }
 0x3f3   :  { %v4415_v56 = vsub.f32 %v681_v11, %v1047_v53  ;;  %v3545_v53 = vld [vmem:[#allocation7 + $0x84] ss:$8 sps:$4 sm:$0xff]  }
 0x3f4   :  { %v4417_v57 = vsub.f32 %v683_v13, %v1051_v55  ;;  %v1039_v58 = vpop.f32.mrb[6].mxu1  ;;  %v3548_v55 = vld [vmem:[#allocation7 + $0x94] ss:$8 sps:$4 sm:$0xff]  }
 0x3f5   :  { %v1064_v59 = vmul.f32 %v4415_v56, %v4415_v56  ;;  %v1055_v60 = vrot.slane %v1039_v58, %v4411_v51  ;;  %v1041_v61 = vpop.f32.mrb[7].mxu1  ;;  %v3546_v58 = vld [vmem:[#allocation7 + $0x90] ss:$8 sps:$4 sm:$0xff]  }
 0x3f6   :  { %v1065_v62 = vmul.f32 %v4417_v57, %v4417_v57  ;;  %v1059_v63 = vrot.slane %v1041_v61, %v4411_v51  ;;  %v3554_v61 = vld [vmem:[#allocation7 + $0xb4] ss:$8 sps:$4 sm:$0xff]  }
 0x3f7   :  { %v1068_v0 = vmul.f32 %v4383_v10, %v1064_v59  ;;  %v4427_v1 = vsub.f32 %v4387_v15, %v1055_v60  ;;  %v3551_v59 = vld [vmem:[#allocation7 + $0xa4] ss:$8 sps:$4 sm:$0xff]   ;;  %v3549_v60 = vld [vmem:[#allocation7 + $0xa0] ss:$8 sps:$4 sm:$0xff]  }
 0x3f8   :  { %v1069_v2 = vmul.f32 %v4383_v10, %v1065_v62  ;;  %v4431_v3 = vsub.f32 %v4391_v19, %v1059_v63  ;;  %v3552_v62 = vld [vmem:[#allocation7 + $0xb0] ss:$8 sps:$4 sm:$0xff]   ;;  %v3557_v63 = vld [vmem:[#allocation7 + $0xc4] ss:$8 sps:$4 sm:$0xff]  }
 0x3f9   :  { %v1072_v5 = vrot.slane %v1068_v0, 4  ;;  %v1066_v6 = vmul.f32 %v4427_v1, %v4427_v1 }
 0x3fa   :  { %v1078_v7 = vrot.slane %v1069_v2, 4  ;;  %v1067_v8 = vmul.f32 %v4431_v3, %v4431_v3 }
 0x3fb   :  { %v1073_v11 = vadd.f32 %v1072_v5, %v1068_v0  ;;  %v1070_v12 = vmul.f32 %v4383_v10, %v1066_v6  ;;  %v3555_v0 = vld [vmem:[#allocation7 + $0xc0] ss:$8 sps:$4 sm:$0xff]  }
 0x3fc   :  { %v1071_v13 = vmul.f32 %v4383_v10, %v1067_v8  ;;  %v1079_v14 = vadd.f32 %v1078_v7, %v1069_v2  ;;  %v1237_v8 = vld [vmem:[#allocation4] sm:$0x1] }
 0x3fd   :  { %v1074_v15 = vrot.slane %v1073_v11, 2  ;;  %v1084_v16 = vrot.slane %v1070_v12, 4 }
 0x3fe   :  { %v1090_v17 = vrot.slane %v1071_v13, 4  ;;  %v1080_v18 = vrot.slane %v1079_v14, 2 }
 0x3ff   :  { %v1085_v19 = vadd.f32 %v1084_v16, %v1070_v12  ;;  %v1075_v20 = vadd.f32 %v1074_v15, %v1073_v11  ;;  %v3563_v15 = vld [vmem:[#allocation7 + $0xe4] ss:$8 sps:$4 sm:$0xff]   ;;  %v3561_v16 = vld [vmem:[#allocation7 + $0xe0] ss:$8 sps:$4 sm:$0xff]  }
 0x400   :  { %v1081_v21 = vadd.f32 %v1080_v18, %v1079_v14  ;;  %v1091_v22 = vadd.f32 %v1090_v17, %v1071_v13  ;;  %v3560_v13 = vld [vmem:[#allocation7 + $0xd4] ss:$8 sps:$4 sm:$0xff]   ;;  %v3558_v14 = vld [vmem:[#allocation7 + $0xd0] ss:$8 sps:$4 sm:$0xff]  }
 0x401   :  { %v1086_v23 = vrot.slane %v1085_v19, 2  ;;  %v1076_v24 = vrot.slane %v1075_v20, 1  ;;  %v3566_v17 = vld [vmem:[#allocation7 + $0xf4] ss:$8 sps:$4 sm:$0xff]   ;;  %v3564_v18 = vld [vmem:[#allocation7 + $0xf0] ss:$8 sps:$4 sm:$0xff]  }
 0x402   :  { %v1082_v25 = vrot.slane %v1081_v21, 1  ;;  %v1092_v26 = vrot.slane %v1091_v22, 2 }
 0x403   :  { %v1077_v29 = vadd.f32 %v1076_v24, %v1075_v20  ;;  %v1087_v30 = vadd.f32 %v1086_v23, %v1085_v19  ;;  %v3569_v19 = vld [vmem:[#allocation7 + $0x104] ss:$8 sps:$4 sm:$0xff]   ;;  %v1406_v20 = vld [vmem:[#allocation6] sm:$0xf] }
 0x404   :  { %v1083_v27 = vadd.f32 %v1082_v25, %v1081_v21  ;;  %v1093_v28 = vadd.f32 %v1092_v26, %v1091_v22  ;;  %v1411_v23 = vrot.slane %v1406_v20, %v4411_v51  ;;  %v1418_v25 = vsub.s32 2, %v4379_v9 }
 0x405   :  { %v1088_v33 = vrot.slane %v1087_v30, 1 }
 0x406   :  { %1160 = vmatprep.mubr.f32.mxu0 %v1083_v27  ;;  %v1094_v31 = vrot.slane %v1093_v28, 1 }
 0x407   :  { %1161 = vmatmul.mubr.f32.vlgmr.msra.gmra.mrb[6].mxu0 %v1077_v29  ;;  %v1089_v34 = vadd.f32 %v1088_v33, %v1087_v30 }
 0x408   :  { %1167 = vmatpush1.xpose.msra.mxu0 %v4398_v44  ;;  %v1095_v32 = vadd.f32 %v1094_v31, %v1093_v28  ;;  %v1422_v28 = vsub.s32 3, %v4379_v9 }
 0x409   :  { %1836 = vmatprep.subr.bf16.mxu0 %v3521_v36 }
 0x40a   :  { %1230 = vmatprep.mubr.f32.mxu0 %v1095_v32 }
 0x40f   :  { %1231 = vmatmul.mubr.f32.vlgmr.msra.gmra.mrb[6].mxu0 %v1089_v34  ;;  %v1419_v34 = vrot.slane %v1406_v20, %v1418_v25 }
 0x410   :  { %1837 = vmatpush1.bf16.msra.mxu0 %v3519_v35 }
 0x411   :  { %1838 = vmatprep.subr.bf16.mxu0 %v3524_v37 }
 0x414   :  { %1839 = vmatpush1.bf16.msra.mxu0 %v3522_v38  ;;  %v1423_v38 = vrot.slane %v1406_v20, %v1422_v28  ;;  %v1447_v28 = vld [vmem:[#allocation9 + $0x18] sm:$0xff] }
 0x415   :  { %1840 = vmatprep.subr.bf16.mxu0 %v3527_v39 }
 0x418   :  { %1841 = vmatpush1.bf16.msra.mxu0 %v3525_v40 }
 0x419   :  { %1842 = vmatprep.subr.bf16.mxu0 %v3530_v41 }
 0x41c   :  { %1843 = vmatpush1.bf16.msra.mxu0 %v3528_v42 }
 0x41d   :  { %1844 = vmatprep.subr.bf16.mxu0 %v3533_v43 }
 0x420   :  { %1845 = vmatpush1.bf16.msra.mxu0 %v3531_v45 }
 0x421   :  { %1846 = vmatprep.subr.bf16.mxu0 %v3536_v46 }
 0x424   :  { %1847 = vmatpush1.bf16.msra.mxu0 %v3534_v47  ;;  %v3567_v47 = vld [vmem:[#allocation7 + $0x100] ss:$8 sps:$4 sm:$0xff]  }
 0x425   :  { %1848 = vmatprep.subr.bf16.mxu0 %v3539_v48 }
 0x428   :  { %1849 = vmatpush1.bf16.msra.mxu0 %v3537_v49  ;;  %v3572_v49 = vld [vmem:[#allocation7 + $0x114] ss:$8 sps:$4 sm:$0xff]  }
 0x429   :  { %1850 = vmatprep.subr.bf16.mxu0 %v3542_v50 }
 0x42c   :  { %1851 = vmatpush1.bf16.msra.mxu0 %v3540_v52 }
 0x42d   :  { %1852 = vmatprep.subr.bf16.mxu0 %v3545_v53 }
 0x430   :  { %1853 = vmatpush1.bf16.msra.mxu0 %v3543_v54  ;;  %v3573_v54 = vld [vmem:[#allocation7 + $0x120] ss:$8 sps:$4 sm:$0xff]  }
 0x431   :  { %1854 = vmatprep.subr.bf16.mxu0 %v3548_v55  ;;  %v3578_v55 = vld [vmem:[#allocation7 + $0x134] ss:$8 sps:$4 sm:$0xff]  }
 0x434   :  { %1855 = vmatpush1.bf16.msra.mxu0 %v3546_v58  ;;  %v3576_v58 = vld [vmem:[#allocation7 + $0x130] ss:$8 sps:$4 sm:$0xff]  }
 0x435   :  { %1856 = vmatprep.subr.bf16.mxu0 %v3551_v59  ;;  %v3581_v59 = vld [vmem:[#allocation7 + $0x144] ss:$8 sps:$4 sm:$0xff]  }
 0x438   :  { %1857 = vmatpush1.bf16.msra.mxu0 %v3549_v60  ;;  %v3579_v60 = vld [vmem:[#allocation7 + $0x140] ss:$8 sps:$4 sm:$0xff]  }
 0x439   :  { %1858 = vmatprep.subr.bf16.mxu0 %v3554_v61  ;;  %v3584_v61 = vld [vmem:[#allocation7 + $0x154] ss:$8 sps:$4 sm:$0xff]  }
 0x43c   :  { %1859 = vmatpush1.bf16.msra.mxu0 %v3552_v62  ;;  %v3582_v62 = vld [vmem:[#allocation7 + $0x150] ss:$8 sps:$4 sm:$0xff]  }
 0x43d   :  { %1860 = vmatprep.subr.bf16.mxu0 %v3557_v63  ;;  %v3587_v63 = vld [vmem:[#allocation7 + $0x164] ss:$8 sps:$4 sm:$0xff]  }
 0x440   :  { %1861 = vmatpush1.bf16.msra.mxu0 %v3555_v0  ;;  %v3585_v0 = vld [vmem:[#allocation7 + $0x160] ss:$8 sps:$4 sm:$0xff]  }
 0x441   :  { %1862 = vmatprep.subr.bf16.mxu0 %v3560_v13  ;;  %v3597_v13 = vld [vmem:[#allocation7 + $0x1a0] ss:$8 sps:$4 sm:$0xff]  }
 0x444   :  { %1863 = vmatpush1.bf16.msra.mxu0 %v3558_v14  ;;  %v3602_v14 = vld [vmem:[#allocation7 + $0x1b4] ss:$8 sps:$4 sm:$0xff]  }
 0x445   :  { %1864 = vmatprep.subr.bf16.mxu0 %v3563_v15  ;;  %v3600_v15 = vld [vmem:[#allocation7 + $0x1b0] ss:$8 sps:$4 sm:$0xff]  }
 0x448   :  { %1865 = vmatpush1.bf16.msra.mxu0 %v3561_v16  ;;  %v3605_v16 = vld [vmem:[#allocation7 + $0x1c4] ss:$8 sps:$4 sm:$0xff]  }
 0x449   :  { %1866 = vmatprep.subr.bf16.mxu0 %v3566_v17  ;;  %v3603_v17 = vld [vmem:[#allocation7 + $0x1c0] ss:$8 sps:$4 sm:$0xff]  }
 0x44c   :  { %1867 = vmatpush1.bf16.msra.mxu0 %v3564_v18  ;;  %v3608_v18 = vld [vmem:[#allocation7 + $0x1d4] ss:$8 sps:$4 sm:$0xff]  }
 0x44d   :  { %1877 = vmatprep.subr.bf16.mxu0 %v3569_v19  ;;  %v3606_v19 = vld [vmem:[#allocation7 + $0x1d0] ss:$8 sps:$4 sm:$0xff]  }
 0x4e2   :  { %v1232_v2 = vpop.f32.mrb[6].mxu0 }
 0x4e3   :  { %v1236_v5 = vmul.f32 0.0078125, %v1232_v2  ;;  %v1234_v6 = vpop.f32.mrb[7].mxu0  ;;  %v3590_v2 = vld [vmem:[#allocation7 + $0x174] ss:$8 sps:$4 sm:$0xff]  }
 0x4e4   :  { %v3593_v6 = vld [vmem:[#allocation7 + $0x184] ss:$8 sps:$4 sm:$0xff]  }
 0x4e5   :  { %v1238_v7 = vadd.f32 1e-05, %v1236_v5  ;;  %v3588_v5 = vld [vmem:[#allocation7 + $0x170] ss:$8 sps:$4 sm:$0xff]  }
 0x4e7   :  { %3643 = vrsqrt.f32 %v1238_v7  ;;  %v3591_v7 = vld [vmem:[#allocation7 + $0x180] ss:$8 sps:$4 sm:$0xff]  }
 0x4f1   :  { %v3644_v11 = vpop.eup %3643 }
 0x4f2   :  { %v1240_v12 = vmul.f32 %v3644_v11, %v1237_v8  ;;  %v3596_v8 = vld [vmem:[#allocation7 + $0x194] ss:$8 sps:$4 sm:$0xff]   ;;  %v3594_v11 = vld [vmem:[#allocation7 + $0x190] ss:$8 sps:$4 sm:$0xff]  }
 0x4f4   :  { %3111 = vmatmul.mubr.msk.f32.vlgmr.msra.gmra.mrb[8].mxu1 %vm898_vm1, %v1240_v12 }
 0x4f5   :  { %1316 = vmatpush1.msra.mxu1 %v4398_v44  ;;  %1379 = vmatprep.mubr.f32.mxu1 %v4016_v4  ;;  %v1414_v44 = vsub.s32 1, %v4379_v9 }
 0x4f7   :  { %v1415_v27 = vrot.slane %v1406_v20, %v1414_v44  ;;  %v3611_v20 = vld [vmem:[#allocation7 + $0x1e4] ss:$8 sps:$4 sm:$0xff]  }
 0x4f8   :  { %3112 = vmatmul.mubr.msk.f32.vlgmr.msra.gmra.mrb[10].mxu1 %vm898_vm1, %v1240_v12  ;;  %v3599_v12 = vld [vmem:[#allocation7 + $0x1a4] ss:$8 sps:$4 sm:$0xff]  }
 0x5c7   :  { %v1310_v21 = vpop.f32.mrb[8].mxu1 }
 0x5c8   :  { %v1389_v22 = vrot.slane %v1310_v21, %v4411_v51  ;;  %v1312_v24 = vpop.f32.mrb[9].mxu1  ;;  %v3609_v21 = vld [vmem:[#allocation7 + $0x1e0] ss:$8 sps:$4 sm:$0xff]  }
 0x5c9   :  { %v1393_v26 = vrot.slane %v1312_v24, %v4411_v51  ;;  %v3612_v24 = vld [vmem:[#allocation7 + $0x1f0] ss:$8 sps:$4 sm:$0xff]  }
 0x5ca   :  { %v1402_v29 = vmul.f32 %v1389_v22, %v4415_v56  ;;  %v3614_v22 = vld [vmem:[#allocation7 + $0x1f4] ss:$8 sps:$4 sm:$0xff]  }
 0x5cb   :  { %v1403_v30 = vmul.f32 %v1393_v26, %v4417_v57  ;;  %v1381_v31 = vpop.f32.mrb[10].mxu1 }
 0x5cc   :  { %v1428_v32 = vadd.f32 %v1411_v23, %v1402_v29  ;;  %v1397_v33 = vrot.slane %v1381_v31, %v4411_v51  ;;  %v1383_v35 = vpop.f32.mrb[11].mxu1  ;;  %v1446_v31 = vld [vmem:[#allocation9 + $0x10] sm:$0xff] }
 0x5cd   :  { %v1429_v36 = vadd.f32 %v1415_v27, %v1403_v30  ;;  %v1401_v37 = vrot.slane %v1383_v35, %v4411_v51  ;;  %v1445_v27 = vld [vmem:[#allocation9 + $0x8] sm:$0xff]  ;;  %v1444_v30 = vld [vmem:[#allocation9] sm:$0xff] }
 0x5ce   :  { %vm1432_vm2 = vcmp.ge.f32.partialorder %v1428_v32, 0.0  ;;  %v1436_v39 = vmul.f32 0.01, %v1428_v32  ;;  %v1404_v40 = vmul.f32 %v1397_v33, %v4427_v1  ;;  %v3570_v1 = vld [vmem:[#allocation7 + $0x110] ss:$8 sps:$4 sm:$0xff]   ;;  %v3351_v29 = vpack.c.bf16 %v1447_v28, %v1445_v27  ;;  %v3618_v27 = vld [vmem:[%s4590_s10 + $0x8] sm:$0xff]  }
 0x5cf   :  { %v1405_v41 = vmul.f32 %v1401_v37, %v4431_v3  ;;  %vm1433_vm3 = vcmp.ge.f32.partialorder %v1429_v36, 0.0  ;;  %v1437_v56 = vmul.f32 0.01, %v1429_v36  ;;  %v3575_v3 = vld [vmem:[#allocation7 + $0x124] ss:$8 sps:$4 sm:$0xff]  }
 0x5d0   :  { %v4458_v42 = vadd.f32 %v1419_v34, %v1404_v40  ;;  %v1440_v57 = vsel %vm1432_vm2, %v1428_v32, %v1436_v39  ;;  %v3353_v32 = vpack.c.bf16 %v1446_v31, %v1444_v30  ;;  %3352 = vmatprep.subr.bf16.mxu1 %v3351_v29  ;;  %v3619_v28 = vld [vmem:[%s4590_s10 + $0x50] sm:$0xff]   ;;  %v3621_v30 = vld [vmem:[%s4590_s10 + $0x58] sm:$0xff]  }
 0x5d1   :  { %v1431_v43 = vadd.f32 %v1423_v38, %v1405_v41  ;;  %v1441_v45 = vsel %vm1433_vm3, %v1429_v36, %v1437_v56  ;;  %v1448_v48 = vpack.c.bf16 %v1440_v57, %v1440_v57  ;;  %v3622_v31 = vld [vmem:[%s4590_s10 + $0x18] sm:$0xff]  }
 0x5d2   :  { %v1449_v46 = vpack.c.bf16 %v1441_v45, %v1441_v45  ;;  %v1438_v23 = vmul.f32 0.01, %v4458_v42  ;;  %vm1434_vm5 = vcmp.ge.f32.partialorder %v4458_v42, 0.0  ;;  %3354 = vmatpush1.bf16.xpose.msra.mxu1 %v3353_v32 }
 0x5d3   :  { %vm1435_vm4 = vcmp.ge.f32.partialorder %v1431_v43, 0.0  ;;  %v1439_v50 = vmul.f32 0.01, %v1431_v43  ;;  %3356 = vmatprep.subr.bf16.mxu1 %v3351_v29 }
 0x5d4   :  { %1868 = vmatprep.mubr.bf16.mxu0 %v1449_v46  ;;  %v1442_v25 = vsel %vm1434_vm5, %v4458_v42, %v1438_v23 }
 0x5d5   :  { %1869 = vmatmul.mubr.bf16.vlgmr.msra.gmra.mrb[8].mxu0 %v1448_v48  ;;  %v1443_v52 = vsel %vm1435_vm4, %v1431_v43, %v1439_v50  ;;  %v1450_v26 = vpack.c.bf16 %v1442_v25, %v1442_v25 }
 0x5d6   :  { %1878 = vmatpush1.bf16.msra.mxu0 %v3567_v47  ;;  %v1451_v53 = vpack.c.bf16 %v1443_v52, %v1443_v52 }
 0x5d7   :  { %1879 = vmatprep.subr.bf16.mxu0 %v3572_v49 }
 0x5d8   :  { %1909 = vmatprep.mubr.bf16.mxu0 %v1451_v53 }
 0x5da   :  { %1880 = vmatpush1.bf16.msra.mxu0 %v3570_v1 }
 0x5db   :  { %1881 = vmatprep.subr.bf16.mxu0 %v3575_v3 }
 0x5de   :  { %1882 = vmatpush1.bf16.msra.mxu0 %v3573_v54 }
 0x5df   :  { %1883 = vmatprep.subr.bf16.mxu0 %v3578_v55 }
 0x5e2   :  { %1884 = vmatpush1.bf16.msra.mxu0 %v3576_v58 }
 0x5e3   :  { %1885 = vmatprep.subr.bf16.mxu0 %v3581_v59 }
 0x5e6   :  { %1886 = vmatpush1.bf16.msra.mxu0 %v3579_v60 }
 0x5e7   :  { %1887 = vmatprep.subr.bf16.mxu0 %v3584_v61 }
 0x5ea   :  { %1888 = vmatpush1.bf16.msra.mxu0 %v3582_v62 }
 0x5eb   :  { %1889 = vmatprep.subr.bf16.mxu0 %v3587_v63 }
 0x5ee   :  { %1890 = vmatpush1.bf16.msra.mxu0 %v3585_v0 }
 0x5ef   :  { %1891 = vmatprep.subr.bf16.mxu0 %v3590_v2 }
 0x5f2   :  { %1892 = vmatpush1.bf16.msra.mxu0 %v3588_v5 }
 0x5f3   :  { %1893 = vmatprep.subr.bf16.mxu0 %v3593_v6 }
 0x5f6   :  { %1894 = vmatpush1.bf16.msra.mxu0 %v3591_v7 }
 0x5f7   :  { %1895 = vmatprep.subr.bf16.mxu0 %v3596_v8 }
 0x5fa   :  { %1896 = vmatpush1.bf16.msra.mxu0 %v3594_v11 }
 0x5fb   :  { %1897 = vmatprep.subr.bf16.mxu0 %v3599_v12 }
 0x5fe   :  { %1898 = vmatpush1.bf16.msra.mxu0 %v3597_v13 }
 0x5ff   :  { %1899 = vmatprep.subr.bf16.mxu0 %v3602_v14 }
 0x602   :  { %1900 = vmatpush1.bf16.msra.mxu0 %v3600_v15 }
 0x603   :  { %1901 = vmatprep.subr.bf16.mxu0 %v3605_v16 }
 0x606   :  { %1902 = vmatpush1.bf16.msra.mxu0 %v3603_v17  ;;  %v3615_v17 = vld [vmem:[%s4590_s10 + $0x40] sm:$0xff]  }
 0x607   :  { %1903 = vmatprep.subr.bf16.mxu0 %v3608_v18 }
 0x60a   :  { %1904 = vmatpush1.bf16.msra.mxu0 %v3606_v19 }
 0x60b   :  { %1905 = vmatprep.subr.bf16.mxu0 %v3611_v20 }
 0x60e   :  { %1906 = vmatpush1.bf16.msra.mxu0 %v3609_v21 }
 0x60f   :  { %1907 = vmatprep.subr.bf16.mxu0 %v3614_v22  ;;  %v2175_v22 = vld [vmem:[#allocation10] sm:$0x1] }
 0x612   :  { %1908 = vmatpush1.bf16.msra.mxu0 %v3612_v24  ;;  %v3616_v24 = vld [vmem:[%s4590_s10] sm:$0xff]  }
 0x615   :  { %1910 = vmatmul.mubr.bf16.vlgmr.msra.gmra.mrb[8].mxu0 %v1450_v26  ;;  %v3617_v26 = vld [vmem:[%s4590_s10 + $0x48] sm:$0xff]  }
 0x616   :  { %3279 = vmatprep.mubr.msk.f32.mxu0 %vm4018_vm9, %v4016_v4 }
 0x6e8   :  { %v1911_v33 = vpop.f32.mrb[8].mxu0 }
 0x6e9   :  { %v1918_v34 = vmul.f32 %v4383_v10, %v1911_v33  ;;  %v1913_v35 = vpop.f32.mrb[9].mxu0 }
 0x6ea   :  { %v1919_v36 = vmul.f32 %v4383_v10, %v1913_v35  ;;  %v1915_v37 = vpop.f32.mrb[10].mxu0 }
 0x6eb   :  { %v1920_v38 = vrot.slane %v1918_v34, 4  ;;  %v1916_v39 = vpop.f32.mrb[11].mxu0  ;;  %v3628_v37 = vld [vmem:[%s4590_s10 + $0x30] sm:$0xff]  }
 0x6ec   :  { %v1926_v40 = vrot.slane %v1919_v36, 4  ;;  %v3630_v39 = vld [vmem:[%s4590_s10 + $0x38] sm:$0xff]  }
 0x6ed   :  { %v1921_v41 = vadd.f32 %v1920_v38, %v1918_v34  ;;  %v3625_v34 = vld [vmem:[%s4590_s10 + $0x68] sm:$0xff]   ;;  %v3629_v38 = vld [vmem:[%s4590_s10 + $0x78] sm:$0xff]  }
 0x6ee   :  { %v1927_v56 = vadd.f32 %v1926_v40, %v1919_v36  ;;  %v3627_v36 = vld [vmem:[%s4590_s10 + $0x70] sm:$0xff]   ;;  %v2263_v40 = vld [vmem:[#allocation12] sm:$0x3] }
 0x6ef   :  { %v1922_v42 = vrot.slane %v1921_v41, 2 }
 0x6f0   :  { %v1928_v57 = vrot.slane %v1927_v56, 2 }
 0x6f1   :  { %v1923_v43 = vadd.f32 %v1922_v42, %v1921_v41  ;;  %v2268_v42 = vrot.slane %v2263_v40, %v4411_v51 }
 0x6f2   :  { %v1929_v45 = vadd.f32 %v1928_v57, %v1927_v56 }
 0x6f3   :  { %v1924_v46 = vrot.slane %v1923_v43, 1 }
 0x6f4   :  { %v1930_v47 = vrot.slane %v1929_v45, 1 }
 0x6f5   :  { %v1925_v49 = vadd.f32 %v1924_v46, %v1923_v43 }
 0x6f6   :  { %v1931_v48 = vadd.f32 %v1930_v47, %v1929_v45  ;;  %v2272_v45 = vrot.slane %v2263_v40, %v1414_v44  ;;  %v4017_v44 = vmov 0.0|0.0  }
 0x6f7   :  { %3367 = vmatprep.subr.bf16.mxu0 %v4017_v44 }
 0x6f8   :  { %1996 = vmatprep.mubr.f32.mxu1 %v1931_v48 }
 0x6f9   :  { %1997 = vmatmul.mubr.f32.vlgmr.msra.gmra.mrb[12].mxu1 %v1925_v49 }
 0x6fa   :  { %3358 = vmatpush1.bf16.msra.mxu1 %v3353_v32  ;;  %2071 = vmatprep.mubr.f32.mxu1 %v4016_v4 }
 0x6fb   :  { %3360 = vmatprep.subr.bf16.mxu1 %v3351_v29 }
 0x7cc   :  { %v1998_v50 = vpop.f32.mrb[12].mxu1 }
 0x7cd   :  { %v2002_v52 = vmul.f32 0.03125, %v1998_v50  ;;  %v2000_v1 = vpop.f32.mrb[13].mxu1 }
 0x7cf   :  { %3177 = vmatmul.mubr.msk.f32.vlgmr.msra.gmra.mrb[14].mxu1 %vm2003_vm6, %v2002_v52 }
 0x7d0   :  { %3362 = vmatpush1.bf16.xpose.msra.mxu1 %v3353_v32 }
 0x7d1   :  { %3364 = vmatprep.subr.bf16.mxu1 %v3351_v29  ;;  %v3620_v29 = vld [vmem:[%s4590_s10 + $0x10] sm:$0xff]  }
 0x8a2   :  { %v2073_v53 = vpop.f32.mrb[14].mxu1 }
 0x8a3   :  { %v2081_v3 = vrot.slane %v2073_v53, %v4411_v51  ;;  %v2075_v54 = vpop.f32.mrb[15].mxu1 }
 0x8a4   :  { %v2085_v55 = vrot.slane %v2075_v54, %v4411_v51 }
 0x8a5   :  { %v4469_v58 = vsub.f32 %v1911_v33, %v2081_v3  ;;  %v3624_v33 = vld [vmem:[%s4590_s10 + $0x20] sm:$0xff]  }
 0x8a6   :  { %v4471_v59 = vsub.f32 %v1913_v35, %v2085_v55  ;;  %v3626_v35 = vld [vmem:[%s4590_s10 + $0x28] sm:$0xff]  }
 0x8a7   :  { %v2088_v60 = vmul.f32 %v4469_v58, %v4469_v58  ;;  %v2283_v55 = vld [vmem:[#allocation13] sm:$0xff] }
 0x8a8   :  { %v2089_v61 = vmul.f32 %v4471_v59, %v4471_v59 }
 0x8a9   :  { %v2090_v62 = vmul.f32 %v4383_v10, %v2088_v60  ;;  %v2284_v60 = vld [vmem:[#allocation13 + $0x8] sm:$0xff] }
 0x8aa   :  { %v2091_v63 = vmul.f32 %v4383_v10, %v2089_v61  ;;  %v3368_v9 = vpack.c.bf16 %v2284_v60, %v2283_v55  ;;  %v3638_v55 = vld [vmem:[#allocation21 + $0x18] sm:$0xff]  }
 0x8ab   :  { %v2092_v0 = vrot.slane %v2090_v62, 4 }
 0x8ac   :  { %v2098_v2 = vrot.slane %v2091_v63, 4  ;;  %3369 = vmatpush3.bf16.xpose.msra.mxu0 %v3368_v9 }
 0x8ad   :  { %v2093_v5 = vadd.f32 %v2092_v0, %v2090_v62  ;;  %3370 = vmatprep.subr.bf16.mxu0 %v4017_v44 }
 0x8ae   :  { %v2099_v6 = vadd.f32 %v2098_v2, %v2091_v63 }
 0x8af   :  { %v2094_v7 = vrot.slane %v2093_v5, 2 }
 0x8b0   :  { %v2100_v8 = vrot.slane %v2099_v6, 2 }
 0x8b1   :  { %v2095_v11 = vadd.f32 %v2094_v7, %v2093_v5 }
 0x8b2   :  { %v2101_v12 = vadd.f32 %v2100_v8, %v2099_v6 }
 0x8b3   :  { %v2096_v13 = vrot.slane %v2095_v11, 1 }
 0x8b4   :  { %v2102_v14 = vrot.slane %v2101_v12, 1 }
 0x8b5   :  { %v2097_v16 = vadd.f32 %v2096_v13, %v2095_v11 }
 0x8b6   :  { %v2103_v15 = vadd.f32 %v2102_v14, %v2101_v12 }
 0x8b8   :  { %2168 = vmatprep.mubr.f32.mxu1 %v2103_v15 }
 0x8b9   :  { %2169 = vmatmul.mubr.f32.vlgmr.msra.gmra.mrb[16].mxu1 %v2097_v16 }
 0x8ba   :  { %3366 = vmatpush1.bf16.msra.mxu1 %v3353_v32  ;;  %2246 = vmatprep.mubr.f32.mxu1 %v4016_v4  ;;  %v3623_v32 = vld [vmem:[%s4590_s10 + $0x60] sm:$0xff]  }
 0x8bb   :  { %3214 = vmatprep.subr.bf16.mxu1 %v3615_v17 }
 0x98c   :  { %v2170_v18 = vpop.f32.mrb[16].mxu1 }
 0x98d   :  { %v2174_v19 = vmul.f32 0.03125, %v2170_v18  ;;  %v2172_v20 = vpop.f32.mrb[17].mxu1 }
 0x98f   :  { %v2176_v21 = vadd.f32 1e-05, %v2174_v19 }
 0x991   :  { %3645 = vrsqrt.f32 %v2176_v21 }
 0x99b   :  { %v3646_v23 = vpop.eup %3645 }
 0x99c   :  { %v2178_v25 = vmul.f32 %v3646_v23, %v2175_v22 }
 0x99e   :  { %3178 = vmatmul.mubr.msk.f32.vlgmr.msra.gmra.mrb[18].mxu1 %vm2003_vm6, %v2178_v25 }
 0x99f   :  { %3215 = vmatpush3.bf16.msra.mxu1 %v3616_v24 }
 0x9a0   :  { %3216 = vmatprep.subr.bf16.mxu1 %v3617_v26 }
 0x9a3   :  { %3217 = vmatpush3.bf16.msra.mxu1 %v3618_v27 }
 0x9a4   :  { %3218 = vmatprep.subr.bf16.mxu1 %v3619_v28 }
 0x9a7   :  { %3219 = vmatpush3.bf16.msra.mxu1 %v3620_v29 }
 0x9a8   :  { %3220 = vmatprep.subr.bf16.mxu1 %v3621_v30 }
 0x9ab   :  { %3221 = vmatpush3.bf16.msra.mxu1 %v3622_v31 }
 0x9ac   :  { %3222 = vmatprep.subr.bf16.mxu1 %v3623_v32 }
 0x9af   :  { %3223 = vmatpush3.bf16.msra.mxu1 %v3624_v33 }
 0x9b0   :  { %3224 = vmatprep.subr.bf16.mxu1 %v3625_v34 }
 0x9b3   :  { %3225 = vmatpush3.bf16.msra.mxu1 %v3626_v35  ;;  %v3631_v35 = vld [vmem:[#allocation18] sm:$0xff]  }
 0x9b4   :  { %3226 = vmatprep.subr.bf16.mxu1 %v3627_v36 }
 0x9b7   :  { %3227 = vmatpush3.bf16.msra.mxu1 %v3628_v37  ;;  %v3632_v37 = vld [vmem:[#allocation18 + $0x8] ss:$0 sps:$4 sm:$0xff]  }
 0x9b8   :  { %3228 = vmatprep.subr.bf16.mxu1 %v3629_v38  ;;  %v2786_v38 = vld [vmem:[%s4610_s20] sm:$0xff] }
 0x9b9   :  { %v2787_v40 = vpack.c.bf16 %v2786_v38, %v2786_v38 }
 0x9bb   :  { %3229 = vmatpush3.bf16.msra.mxu1 %v3630_v39  ;;  %v2813_v39 = vsel %vm2811_vm11, %v3632_v37, 0 }
 0x9bc   :  { %3373 = vmatprep.subr.bf16.mxu1 %v4017_v44 }
 0xa71   :  { %v2248_v41 = vpop.f32.mrb[18].mxu1 }
 0xa72   :  { %v2256_v56 = vrot.slane %v2248_v41, %v4411_v51  ;;  %v2250_v57 = vpop.f32.mrb[19].mxu1  ;;  %v3633_v41 = vld [vmem:[#allocation22] sm:$0xff]  }
 0xa73   :  { %v2260_v43 = vrot.slane %v2250_v57, %v4411_v51 }
 0xa74   :  { %v2261_v46 = vmul.f32 %v2256_v56, %v4469_v58  ;;  %v2285_v58 = vld [vmem:[#allocation13 + $0x10] sm:$0xff]  ;;  %v3634_v56 = vld [vmem:[#allocation22 + $0x8] sm:$0xff]  }
 0xa75   :  { %v2262_v47 = vmul.f32 %v2260_v43, %v4471_v59  ;;  %v2286_v59 = vld [vmem:[#allocation13 + $0x18] sm:$0xff]  ;;  %v3198_v43 = vld [vmem:[#allocation19] ss:$0 sm:$0xff] }
 0xa76   :  { %v2275_v48 = vadd.f32 %v2268_v42, %v2261_v46  ;;  %v3371_v61 = vpack.c.bf16 %v2286_v59, %v2285_v58  ;;  %v3197_v58 = vld [vmem:[#allocation16] ss:$0 sm:$0xff]  ;;  %v3640_v59 = vld [vmem:[#allocation21 + $0x28] sm:$0xff]  }
 0xa77   :  { %v2276_v49 = vadd.f32 %v2272_v45, %v2262_v47 }
 0xa78   :  { %vm2277_vm7 = vcmp.ge.f32.partialorder %v2275_v48, 0.0  ;;  %v2279_v50 = vmul.f32 0.01, %v2275_v48  ;;  %3372 = vmatpush3.bf16.xpose.msra.mxu0 %v3371_v61 }
 0xa79   :  { %vm2278_vm8 = vcmp.ge.f32.partialorder %v2276_v49, 0.0  ;;  %v2280_v52 = vmul.f32 0.01, %v2276_v49 }
 0xa7a   :  { %v2281_v1 = vsel %vm2277_vm7, %v2275_v48, %v2279_v50 }
 0xa7b   :  { %v2282_v53 = vsel %vm2278_vm8, %v2276_v49, %v2280_v52  ;;  %v2287_v54 = vpack.c.bf16 %v2281_v1, %v2281_v1  ;;  %v3635_v1 = vld [vmem:[#allocation21] sm:$0xff]  }
 0xa7c   :  { %v2288_v3 = vpack.c.bf16 %v2282_v53, %v2282_v53 }
 0xa7e   :  { %2449 = vmatprep.mubr.bf16.mxu1 %v2288_v3  ;;  %v3636_v3 = vld [vmem:[#allocation21 + $0x8] sm:$0xff]  }
 0xa7f   :  { %2450 = vmatmul.mubr.bf16.vlgmr.msra.gmra.mrb[20].mxu1 %v2287_v54  ;;  %v3637_v54 = vld [vmem:[#allocation21 + $0x10] sm:$0xff]  }
 0xa80   :  { %3375 = vmatpush3.bf16.msra.mxu1 %v3368_v9  ;;  %3290 = vmatprep.mubr.msk.f32.mxu1 %vm4018_vm9, %v4016_v4 }
 0xa81   :  { %3376 = vmatprep.subr.bf16.mxu1 %v4017_v44 }
 0xa84   :  { %3378 = vmatpush3.bf16.msra.mxu1 %v3371_v61 }
 0xa85   :  { %3379 = vmatprep.subr.bf16.mxu1 %v4017_v44 }
 0xb52   :  { %v3230_v62 = vpop.f32.mrb[20].mxu1 }
 0xb53   :  { %v3231_v63 = vpop.f32.mrb[21].mxu1 }
 0xb54   :  { %v3232_v0 = vadd.f32 %v3231_v63, %v3230_v62  ;;  %v3233_v2 = vpop.f32.mrb[22].mxu1  ;;  %v3641_v62 = vld [vmem:[#allocation21 + $0x30] sm:$0xff]  }
 0xb55   :  { %v3234_v5 = vpop.f32.mrb[23].mxu1 }
 0xb56   :  { %v2457_v6 = vmul.f32 %v3232_v0, %v4383_v10 }
 0xb58   :  { %v2458_v7 = vrot.slane %v2457_v6, 4 }
 0xb5a   :  { %v2459_v8 = vadd.f32 %v2458_v7, %v2457_v6 }
 0xb5c   :  { %v2460_v11 = vrot.slane %v2459_v8, 2 }
 0xb5e   :  { %v2461_v12 = vadd.f32 %v2460_v11, %v2459_v8 }
 0xb60   :  { %v2462_v13 = vrot.slane %v2461_v12, 1 }
 0xb62   :  { %v2463_v14 = vadd.f32 %v2462_v13, %v2461_v12  ;;  %v3213_v12 = vld [vmem:[#allocation24] ss:$0 sm:$0xff] }
 0xb64   :  { %3280 = vmatmul.mubr.f32.vlgmr.msra.gmra.mrb[12].mxu0 %v2463_v14 }
 0xc37   :  { %v2530_v15 = vpop.f32.mrb[12].mxu0 }
 0xc38   :  { %v2534_v16 = vmul.f32 0.125, %v2530_v15  ;;  %v3281_v17 = vpop.f32.mrb[13].mxu0 }
 0xc3a   :  { %3291 = vmatmul.mubr.msk.f32.vlgmr.msra.gmra.mrb[24].mxu1 %vm2535_vm10, %v2534_v16 }
 0xc3b   :  { %3381 = vmatpush3.bf16.xpose.msra.mxu1 %v3368_v9  ;;  %3301 = vmatprep.mubr.msk.f32.mxu1 %vm4018_vm9, %v4016_v4 }
 0xc3c   :  { %3382 = vmatprep.subr.bf16.mxu1 %v4017_v44 }
 0xc43   :  { %3384 = vmatpush3.bf16.xpose.msra.mxu1 %v3371_v61 }
 0xc44   :  { %3385 = vmatprep.subr.bf16.mxu1 %v4017_v44 }
 0xd0d   :  { %v2605_v18 = vpop.f32.mrb[24].mxu1 }
 0xd0e   :  { %v2612_v19 = vrot.slane %v2605_v18, %v4411_v51  ;;  %v3292_v20 = vpop.f32.mrb[25].mxu1 }
 0xd10   :  { %v4545_v21 = vsub.f32 %v3232_v0, %v2612_v19 }
 0xd12   :  { %v2614_v22 = vmul.f32 %v4545_v21, %v4545_v21 }
 0xd14   :  { %v2615_v23 = vmul.f32 %v4383_v10, %v2614_v22  ;;  %v2693_v10 = vld [vmem:[#allocation15] sm:$0x1] }
 0xd16   :  { %v2616_v24 = vrot.slane %v2615_v23, 4 }
 0xd18   :  { %v2617_v25 = vadd.f32 %v2616_v24, %v2615_v23 }
 0xd1a   :  { %v2618_v26 = vrot.slane %v2617_v25, 2 }
 0xd1c   :  { %v2619_v27 = vadd.f32 %v2618_v26, %v2617_v25 }
 0xd1e   :  { %v2620_v28 = vrot.slane %v2619_v27, 1 }
 0xd20   :  { %v2621_v29 = vadd.f32 %v2620_v28, %v2619_v27 }
 0xd22   :  { %3302 = vmatmul.mubr.f32.vlgmr.msra.gmra.mrb[26].mxu1 %v2621_v29 }
 0xd23   :  { %3387 = vmatpush3.bf16.msra.mxu1 %v3368_v9  ;;  %3312 = vmatprep.mubr.msk.f32.mxu1 %vm4018_vm9, %v4016_v4  ;;  %v3639_v9 = vld [vmem:[#allocation21 + $0x20] sm:$0xff]  }
 0xd24   :  { %3388 = vmatprep.subr.bf16.mxu1 %v4017_v44 }
 0xd27   :  { %3390 = vmatpush3.bf16.msra.mxu1 %v3371_v61 }
 0xd28   :  { %3315 = vmatprep.subr.bf16.mxu1 %v4016_v4 }
 0xdf5   :  { %v2688_v30 = vpop.f32.mrb[26].mxu1 }
 0xdf6   :  { %v2692_v31 = vmul.f32 0.125, %v2688_v30  ;;  %v3303_v32 = vpop.f32.mrb[27].mxu1 }
 0xdf8   :  { %v2694_v33 = vadd.f32 1e-05, %v2692_v31 }
 0xdfa   :  { %3647 = vrsqrt.f32 %v2694_v33 }
 0xe04   :  { %v3648_v34 = vpop.eup %3647 }
 0xe05   :  { %v2696_v36 = vmul.f32 %v3648_v34, %v2693_v10 }
 0xe07   :  { %3313 = vmatmul.mubr.msk.f32.vlgmr.msra.gmra.mrb[28].mxu1 %vm2535_vm10, %v2696_v36 }
 0xe08   :  { %3316 = vmatpush3.bf16.msra.mxu1 %v3631_v35  ;;  %3319 = vmatprep.mubr.msk.bf16.mxu1 %vm4018_vm9, %v4016_v4 }
 0xe09   :  { %3317 = vmatprep.subr.bf16.mxu1 %v4016_v4 }
 0xe0c   :  { %3318 = vmatpush3.bf16.msra.mxu1 %v2813_v39 }
 0xe0d   :  { %3323 = vmatprep.subr.bf16.mxu1 %v4016_v4 }
 0xe0f   :  { %3320 = vmatmul.mubr.msk.bf16.vlgmr.msra.gmra.mrb[32].mxu1 %vm2807_vm12, %v2787_v40 }
 0xe10   :  { %3327 = vmatprep.mubr.msk.bf16.mxu1 %vm4018_vm9, %v4016_v4  ;;  %3324 = vmatpush3.bf16.msra.mxu1 %v3633_v41 }
 0xe11   :  { %3325 = vmatprep.subr.bf16.mxu1 %v4016_v4 }
 0xe14   :  { %3326 = vmatpush3.bf16.msra.mxu1 %v3634_v56 }
 0xe15   :  { %3331 = vmatprep.subr.bf16.mxu1 %v4016_v4 }
 0xeda   :  { %v2766_v42 = vpop.f32.mrb[28].mxu1 }
 0xedb   :  { %v3314_v57 = vpop.f32.mrb[29].mxu1  ;;  %v2773_v60 = vrot.slane %v2766_v42, %v4411_v51  ;;  %v3642_v51 = vld [vmem:[#allocation21 + $0x38] sm:$0xff]  }
 0xedd   :  { %v2774_v44 = vmul.f32 %v2773_v60, %v4545_v21 }
 0xedf   :  { %v2782_v61 = vadd.f32 %v3197_v58, %v2774_v44 }
 0xee1   :  { %v2784_v63 = vmul.f32 0.01, %v2782_v61  ;;  %vm2783_vm14 = vcmp.ge.f32.partialorder %v2782_v61, 0.0 }
 0xee2   :  { %v2849_v45 = vpop.f32.mrb[32].mxu1 }
 0xee3   :  { %v2850_v46 = vadd.f32 %v3198_v43, %v2849_v45  ;;  %v3321_v47 = vpop.f32.mrb[33].mxu1  ;;  %v2785_v0 = vsel %vm2783_vm14, %v2782_v61, %v2784_v63 }
 0xee4   :  { %v2852_v48 = vpop.f32.mrb[34].mxu1  ;;  %v2858_v2 = vpack.c.bf16 %v2785_v0, %v2785_v0 }
 0xee5   :  { %vm2855_vm13 = vcmp.ge.f32.partialorder %v2850_v46, 0.0  ;;  %v2856_v49 = vmul.f32 0.01, %v2850_v46  ;;  %v3322_v50 = vpop.f32.mrb[35].mxu1 }
 0xee7   :  { %v2857_v52 = vsel %vm2855_vm13, %v2850_v46, %v2856_v49 }
 0xee8   :  { %v2875_v53 = vpack.c.bf16 %v2857_v52, %v2857_v52 }
 0xeea   :  { %3328 = vmatmul.mubr.msk.bf16.vlgmr.msra.gmra.mrb[36].mxu1 %vm2535_vm10, %v2875_v53 }
 0xeeb   :  { %3332 = vmatpush3.bf16.msra.mxu1 %v3635_v1  ;;  %3347 = vmatprep.mubr.msk.bf16.mxu1 %vm4018_vm9, %v4016_v4 }
 0xeec   :  { %3333 = vmatprep.subr.bf16.mxu1 %v4016_v4 }
 0xeef   :  { %3334 = vmatpush3.bf16.msra.mxu1 %v3636_v3 }
 0xef0   :  { %3335 = vmatprep.subr.bf16.mxu1 %v4016_v4 }
 0xef3   :  { %3336 = vmatpush3.bf16.msra.mxu1 %v3637_v54 }
 0xef4   :  { %3337 = vmatprep.subr.bf16.mxu1 %v4016_v4 }
 0xef7   :  { %3338 = vmatpush3.bf16.msra.mxu1 %v3638_v55 }
 0xef8   :  { %3339 = vmatprep.subr.bf16.mxu1 %v4016_v4 }
 0xefb   :  { %3340 = vmatpush3.bf16.msra.mxu1 %v3639_v9 }
 0xefc   :  { %3341 = vmatprep.subr.bf16.mxu1 %v4016_v4 }
 0xeff   :  { %3342 = vmatpush3.bf16.msra.mxu1 %v3640_v59 }
 0xf00   :  { %3343 = vmatprep.subr.bf16.mxu1 %v4016_v4 }
 0xf03   :  { %3344 = vmatpush3.bf16.msra.mxu1 %v3641_v62 }
 0xf04   :  { %3345 = vmatprep.subr.bf16.mxu1 %v4016_v4 }
 0xf07   :  { %3346 = vmatpush3.bf16.msra.mxu1 %v3642_v51 }
 0xf0a   :  { %3348 = vmatmul.mubr.bf16.vlgmr.msra.gmra.mrb[40].mxu1 %v2858_v2 }
 0xfbd   :  { %v2929_v5 = vpop.f32.mrb[36].mxu1 }
 0xfbe   :  { %v3329_v6 = vpop.f32.mrb[37].mxu1 }
 0xfbf   :  { %v2932_v7 = vpop.f32.mrb[38].mxu1 }
 0xfc0   :  { %v3330_v8 = vpop.f32.mrb[39].mxu1 }
 0xfdd   :  { %v3017_v11 = vpop.f32.mrb[40].mxu1 }
 0xfde   :  { %v3018_v13 = vadd.f32 %v3017_v11, %v2929_v5  ;;  %v3349_v14 = vpop.f32.mrb[41].mxu1 }
 0xfdf   :  { %v3020_v15 = vpop.f32.mrb[42].mxu1 }
 0xfe0   :  { %v3030_v16 = vadd.f32 %v3213_v12, %v3018_v13  ;;  %v3350_v17 = vpop.f32.mrb[43].mxu1 }
 0xfe2   :  { %3031 = vst [vmem:[%s4599_s19] sm:$0xff] %v3030_v16 }
 0xfe3   :  { %3036 = vsyncpa [#allocation3], 1 }
 0xfe4   :  { %3037 = vsyncpa [#allocation5], 1 }
 0xfe5   :  { %3038 = vsyncpa [#allocation8], 1 }
 0xfe6   :  { %3039 = vsyncpa [#allocation11], 1 }
 0xfe7   :  { %3040 = vsyncpa [#allocation14], 1 }
 0xfe8   :  { %3041 = vsyncpa [#allocation17], 1 }
 0xfe9   :  { %3042 = vsyncpa [#allocation20], 1 }
 0xfea   :  { %3043 = vsyncpa [#allocation23], 1 }

</bundles_post_ra>
